<compile_context>
chip_gen: v6e
topology: v6e:2x2x1
jax: 0.10.0
libtpu: 0.0.40
codegen_flags: <defaults>
</compile_context>

<pallas_src>
import functools

import jax
import jax.numpy as jnp
from jax.experimental import pallas as pl
from jax.experimental.pallas import tpu as pltpu

TEMPERATURE = 0.07
BASE_TEMPERATURE = 0.07
EPS = 1e-6
LANES = 128            # vreg lane width; per-lane accumulator width
NEG_BIG = -1.0e30      # finite "-inf": avoids (-inf) - (-inf) = nan in rescales


def _round_up(x, m):
    return (x + m - 1) // m * m


def _supcon_kernel(q_ref, k_ref, labc_ref, labr_ref, out_ref,
                   qs_scr, m_scr, z_scr, spos_scr, npos_scr,
                   *, bs, tn, inv_temp, loss_scale, needs_col_mask,
                   k_resident, eps):
    i = pl.program_id(0)
    j = pl.program_id(1)
    tm = q_ref.shape[0]

    # ---- once per row block: reset accumulators, pre-scale + cast q --------
    @pl.when(j == 0)
    def _():
        # 1/T scale in f32, then bf16; q is invariant along the column axis.
        qs_scr[...] = (q_ref[...].astype(jnp.float32) * inv_temp).astype(jnp.bfloat16)
        m_scr[...] = jnp.full(m_scr.shape, NEG_BIG, jnp.float32)
        z_scr[...] = jnp.zeros(z_scr.shape, jnp.float32)
        spos_scr[...] = jnp.zeros(spos_scr.shape, jnp.float32)
        npos_scr[...] = jnp.zeros(npos_scr.shape, jnp.float32)

    # ---- MXU: one bf16 NT matmul for the whole (tm, tn) tile ---------------
    if k_resident:   # static: contrast features are VMEM-resident, slice them
        col0 = pl.multiple_of(j * tn, tn)
        k = k_ref[pl.ds(col0, tn), :]
    else:
        k = k_ref[...]
    sim = jax.lax.dot_general(qs_scr[...], k, (((1,), (1,)), ((), ())),
                              preferred_element_type=jnp.float32)       # [tm, tn] f32

    row_idx = i * tm + jax.lax.broadcasted_iota(jnp.int32, (tm, 1), 0)  # [tm, 1]
    lab_c = labc_ref[...]                                               # [tm, 1] int32
    lab_r = labr_ref[...]                                               # [1, tn] int32

    # ---- per-lane online softmax: VPU-only updates per 128-lane chunk ------
    for c in range(tn // LANES):                 # static, unrolled at trace time
        lo = c * LANES
        chunk = sim[:, lo:lo + LANES]                                   # [tm, 128]
        col_idx = (j * tn + lo
                   + jax.lax.broadcasted_iota(jnp.int32, (1, LANES), 1))
        diag = row_idx == col_idx
        pos = jnp.logical_and(lab_c == lab_r[:, lo:lo + LANES],
                              jnp.logical_not(diag))
        if needs_col_mask:    # static: only when bs was padded
            col_ok = col_idx < bs
            pos = jnp.logical_and(pos, col_ok)
            excl = jnp.logical_or(diag, jnp.logical_not(col_ok))
            chunk_mx = jnp.where(col_ok, chunk, NEG_BIG)   # padded cols out of max
        else:
            excl = diag
            chunk_mx = chunk

        # positive-pair accumulators (selects, no f32 mask materialization)
        spos_scr[...] += jnp.where(pos, chunk, 0.0)
        npos_scr[...] += jnp.where(pos, 1.0, 0.0)

        # per-lane running max / denominator (diag in the max, out of the sum)
        m_prev = m_scr[...]
        m_new = jnp.maximum(m_prev, chunk_mx)
        e = jnp.where(excl, 0.0, jnp.exp(chunk - m_new))
        z_scr[...] = z_scr[...] * jnp.exp(m_prev - m_new) + e
        m_scr[...] = m_new

    # ---- epilogue: the only lane (XLU) reductions, once per row block ------
    @pl.when(j == pl.num_programs(1) - 1)
    def _():
        m_lane = m_scr[...]
        m_row = jnp.max(m_lane, axis=1, keepdims=True)                  # [tm, 1]
        z_row = jnp.sum(z_scr[...] * jnp.exp(m_lane - m_row),
                        axis=1, keepdims=True)
        spos = jnp.sum(spos_scr[...], axis=1, keepdims=True)
        npos = jnp.sum(npos_scr[...], axis=1, keepdims=True)
        # sum_j mask*log_prob = sum_j mask*sim - P*(m + log(z + eps))
        num = spos - npos * (m_row + jnp.log(z_row + eps))
        denom = jnp.where(npos < 1e-6, 1.0, npos)
        out_ref[...] = (-loss_scale) * num * pl.reciprocal(denom, approx=False)


def supcon_loss(features, labels, *, temperature=TEMPERATURE,
                base_temperature=BASE_TEMPERATURE,
                tn_target=512, resident_bytes_budget=6 * 1024 * 1024):
    bs, dim = features.shape
    if labels.shape[0] != bs:
        raise ValueError('Num of labels does not match num of features')

    # Tile selection: lane-dense dim (x128); column tile tn up to 512 (HBM
    # roofline + grid-overhead amortization); row tile tm 128 (256 for big
    # batches: fills the 256-wide MXU on v6e/v7x while keeping >= 2 row blocks
    # for megacore).  tm | tn so padding bs to a multiple of tn covers rows.
    dim_pad = _round_up(dim, 128)
    tn = min(tn_target, _round_up(bs, LANES))
    tm = 256 if bs >= 1024 else 128
    tm = min(tm, tn)
    bs_pad = _round_up(bs, tn)
    grid_rows = pl.cdiv(bs, tm)                 # no dead row blocks in padding
    grid_cols = bs_pad // tn
    rows_out = grid_rows * tm

    # bf16 features: halves feature HBM traffic and feeds the MXU natively.
    f = features.astype(jnp.bfloat16)
    if (bs_pad, dim_pad) != (bs, dim):
        f = jnp.pad(f, ((0, bs_pad - bs), (0, dim_pad - dim)))
    lab = labels.reshape(bs).astype(jnp.int32)
    if bs_pad != bs:
        lab = jnp.pad(lab, (0, bs_pad - bs), constant_values=-1)
    lab_col = lab.reshape(bs_pad, 1)
    lab_row = lab.reshape(1, bs_pad)

    # Keep the whole contrast matrix resident in VMEM when small enough:
    # features are then DMA'd ~once instead of once per row block.
    k_resident = bs_pad * dim_pad * 2 <= resident_bytes_budget
    if k_resident:
        k_spec = pl.BlockSpec((bs_pad, dim_pad), lambda i, j: (0, 0))
    else:
        k_spec = pl.BlockSpec((tn, dim_pad), lambda i, j: (j, 0))

    kernel = functools.partial(
        _supcon_kernel,
        bs=bs, tn=tn,
        inv_temp=1.0 / temperature,
        loss_scale=temperature / base_temperature,
        needs_col_mask=(bs_pad != bs),
        k_resident=k_resident,
        eps=EPS,
    )

    # Explicit VMEM budget: raises v5e's 16 MiB scoped default, stays inside
    # v7x's 64 MiB physical VMEM per TensorCore.
    k_rows = bs_pad if k_resident else tn
    est_vmem = (2 * tm * dim_pad * 2          # q double-buffer (bf16)
                + 2 * k_rows * dim_pad * 2    # k buffers (bf16)
                + tm * dim_pad * 2            # scaled-q scratch
                + 4 * tm * LANES * 4          # per-lane accumulators
                + 2 * tm * tn * 4             # sim-tile headroom
                + (1 << 20))                  # misc slack
    vmem_limit = int(min(max(32 << 20, est_vmem), 48 << 20))

    feat_reads = (rows_out + (bs_pad if k_resident else grid_rows * bs_pad)) * dim_pad
    cost = pl.CostEstimate(
        flops=2 * rows_out * bs_pad * dim_pad,
        transcendentals=2 * rows_out * bs_pad,
        bytes_accessed=feat_reads * 2 + (rows_out + grid_rows * bs_pad) * 4
                       + rows_out * 4,
    )

    per_row = pl.pallas_call(
        kernel,
        out_shape=jax.ShapeDtypeStruct((rows_out, 1), jnp.float32),
        grid_spec=pltpu.PrefetchScalarGridSpec(
            num_scalar_prefetch=0,
            grid=(grid_rows, grid_cols),
            in_specs=[
                pl.BlockSpec((tm, dim_pad), lambda i, j: (i, 0)),   # anchor rows
                k_spec,                                             # contrast rows
                pl.BlockSpec((tm, 1), lambda i, j: (i, 0)),         # labels, column view
                pl.BlockSpec((1, tn), lambda i, j: (0, j)),         # labels, row view
            ],
            out_specs=pl.BlockSpec((tm, 1), lambda i, j: (i, 0)),
            scratch_shapes=[
                pltpu.VMEM((tm, dim_pad), jnp.bfloat16),            # scaled q (bf16)
                pltpu.VMEM((tm, LANES), jnp.float32),               # per-lane max
                pltpu.VMEM((tm, LANES), jnp.float32),               # per-lane denom
                pltpu.VMEM((tm, LANES), jnp.float32),               # per-lane sum pos*sim
                pltpu.VMEM((tm, LANES), jnp.float32),               # per-lane num pos
            ],
        ),
        compiler_params=pltpu.CompilerParams(
            dimension_semantics=("parallel", "arbitrary"),
            vmem_limit_bytes=vmem_limit),
        cost_estimate=cost,
    )(f, f, lab_col, lab_row)

    return jnp.sum(per_row[:bs, 0]) / bs


def supcon_loss_ref(features, labels, temperature=TEMPERATURE,
                    base_temperature=BASE_TEMPERATURE):
    # Pure-JAX reference mirroring the PyTorch forward (f32 throughout).
    f = features.astype(jnp.float32)
    bs = f.shape[0]
    lab = labels.reshape(-1, 1)
    mask = (lab == lab.T).astype(jnp.float32)
    sim = (f @ f.T) / temperature
    logits = sim - jnp.max(sim, axis=1, keepdims=True)
    logits_mask = 1.0 - jnp.eye(bs, dtype=jnp.float32)
    mask = mask * logits_mask
    exp_logits = jnp.exp(logits) * logits_mask
    log_prob = logits - jnp.log(jnp.sum(exp_logits, axis=1, keepdims=True) + EPS)
    mpp = jnp.sum(mask, axis=1)
    mpp = jnp.where(mpp < 1e-6, 1.0, mpp)
    mean_log_prob_pos = jnp.sum(mask * log_prob, axis=1) / mpp
    return jnp.mean(-(temperature / base_temperature) * mean_log_prob_pos)


if __name__ == "__main__":
    keys = jax.random.split(jax.random.PRNGKey(0), 6)

    def check(kf, kl, bs, dim, n_cls, **kw):
        feats = jax.random.normal(kf, (bs, dim), dtype=jnp.float32)
        labs = jax.random.randint(kl, (bs,), 0, n_cls, dtype=jnp.int32)
        out = supcon_loss(feats, labs, **kw)
        jax.block_until_ready(out)
        ref = supcon_loss_ref(feats, labs)
        assert bool(jnp.isfinite(out)), (out, kw)
        # bf16 matmul operands -> relax tolerance (log-softmax math stays f32).
        assert jnp.allclose(out, ref, rtol=2e-2, atol=2e-2), (out, ref, kw)

    # Small shape consistent with the module ([bs, dim] features, [bs] labels).
    check(keys[0], keys[1], bs=8, dim=32, n_cls=3)
    # Non-tile-aligned shape: padded columns + multiple row blocks.
    check(keys[2], keys[3], bs=200, dim=96, n_cls=10)
    # Multi-column-block online-softmax merge (incl. fully-padded lane chunks),
    # with both the VMEM-resident and the tiled contrast-feature paths.
    check(keys[4], keys[5], bs=600, dim=48, n_cls=20)
    check(keys[4], keys[5], bs=600, dim=48, n_cls=20, resident_bytes_budget=0)

    print("KERNEL_OK")
</pallas_src>

<mosaic_0001>
module attributes {stable_mosaic.version = 11 : i64} {
  func.func @_supcon_kernel(%arg0: i32, %arg1: i32, %arg2: memref<128x128xbf16, #tpu.memory_space<vmem>>, %arg3: memref<128x128xbf16, #tpu.memory_space<vmem>>, %arg4: memref<128x1xi32, #tpu.memory_space<vmem>>, %arg5: memref<1x128xi32, #tpu.memory_space<vmem>>, %arg6: memref<128x1xf32, #tpu.memory_space<vmem>>, %arg7: memref<128x128xbf16, #tpu.memory_space<vmem>>, %arg8: memref<128x128xf32, #tpu.memory_space<vmem>>, %arg9: memref<128x128xf32, #tpu.memory_space<vmem>>, %arg10: memref<128x128xf32, #tpu.memory_space<vmem>>, %arg11: memref<128x128xf32, #tpu.memory_space<vmem>>) attributes {dimension_semantics = [#tpu.dimension_semantics<parallel>, #tpu.dimension_semantics<arbitrary>], iteration_bounds = array<i64: 1, 1>, scalar_prefetch = 0 : i64, scratch_operands = 5 : i64, tpu.core_type = #tpu.core_type<tc>, window_params = [{transform_indices = @transform_0, window_bounds = array<i64: 128, 128>}, {pipeline_mode = #tpu.pipeline_mode<synchronous>, transform_indices = @transform_1, window_bounds = array<i64: 128, 128>}, {transform_indices = @transform_2, window_bounds = array<i64: 128, 1>}, {transform_indices = @transform_3, window_bounds = array<i64: 1, 128>}, {transform_indices = @transform_4, window_bounds = array<i64: 128, 1>}]} {
    %c0_i32 = arith.constant 0 : i32
    %0 = arith.cmpi eq, %arg1, %c0_i32 : i32
    %1 = arith.extui %0 : i1 to i32
    %c0_i32_0 = arith.constant 0 : i32
    %2 = arith.cmpi ne, %1, %c0_i32_0 : i32
    scf.if %2 {
      %c0_35 = arith.constant 0 : index
      %c0_36 = arith.constant 0 : index
      %66 = vector.load %arg2[%c0_35, %c0_36] : memref<128x128xbf16, #tpu.memory_space<vmem>>, vector<128x128xbf16>
      %67 = arith.extf %66 : vector<128x128xbf16> to vector<128x128xf32>
      %cst_37 = arith.constant 14.2857141 : f32
      %68 = vector.broadcast %cst_37 : f32 to vector<128x128xf32>
      %69 = arith.mulf %67, %68 : vector<128x128xf32>
      %70 = arith.truncf %69 : vector<128x128xf32> to vector<128x128xbf16>
      %c0_38 = arith.constant 0 : index
      %c0_39 = arith.constant 0 : index
      %71 = vector.load %arg7[%c0_38, %c0_39] : memref<128x128xbf16, #tpu.memory_space<vmem>>, vector<128x128xbf16>
      tpu.vector_store %arg7[%c0_38, %c0_39], %70 {strides = array<i32>} : memref<128x128xbf16, #tpu.memory_space<vmem>>, vector<128x128xbf16>,
      %cst_40 = arith.constant -1.000000e+30 : f32
      %72 = vector.broadcast %cst_40 : f32 to vector<128x128xf32>
      %c0_41 = arith.constant 0 : index
      %c0_42 = arith.constant 0 : index
      %73 = vector.load %arg8[%c0_41, %c0_42] : memref<128x128xf32, #tpu.memory_space<vmem>>, vector<128x128xf32>
      tpu.vector_store %arg8[%c0_41, %c0_42], %72 {strides = array<i32>} : memref<128x128xf32, #tpu.memory_space<vmem>>, vector<128x128xf32>,
      %cst_43 = arith.constant 0.000000e+00 : f32
      %74 = vector.broadcast %cst_43 : f32 to vector<128x128xf32>
      %c0_44 = arith.constant 0 : index
      %c0_45 = arith.constant 0 : index
      %75 = vector.load %arg9[%c0_44, %c0_45] : memref<128x128xf32, #tpu.memory_space<vmem>>, vector<128x128xf32>
      tpu.vector_store %arg9[%c0_44, %c0_45], %74 {strides = array<i32>} : memref<128x128xf32, #tpu.memory_space<vmem>>, vector<128x128xf32>,
      %cst_46 = arith.constant 0.000000e+00 : f32
      %76 = vector.broadcast %cst_46 : f32 to vector<128x128xf32>
      %c0_47 = arith.constant 0 : index
      %c0_48 = arith.constant 0 : index
      %77 = vector.load %arg10[%c0_47, %c0_48] : memref<128x128xf32, #tpu.memory_space<vmem>>, vector<128x128xf32>
      tpu.vector_store %arg10[%c0_47, %c0_48], %76 {strides = array<i32>} : memref<128x128xf32, #tpu.memory_space<vmem>>, vector<128x128xf32>,
      %cst_49 = arith.constant 0.000000e+00 : f32
      %78 = vector.broadcast %cst_49 : f32 to vector<128x128xf32>
      %c0_50 = arith.constant 0 : index
      %c0_51 = arith.constant 0 : index
      %79 = vector.load %arg11[%c0_50, %c0_51] : memref<128x128xf32, #tpu.memory_space<vmem>>, vector<128x128xf32>
      tpu.vector_store %arg11[%c0_50, %c0_51], %78 {strides = array<i32>} : memref<128x128xf32, #tpu.memory_space<vmem>>, vector<128x128xf32>,
    } else {
    }
    %c128_i32 = arith.constant 128 : i32
    %3 = arith.muli %arg1, %c128_i32 : i32
    %4 = tpu.assume_multiple %3, 128 : i32
    %5 = arith.index_cast %4 : i32 to index
    %c0 = arith.constant 0 : index
    %6 = vector.load %arg3[%5, %c0] : memref<128x128xbf16, #tpu.memory_space<vmem>>, vector<128x128xbf16>
    %c0_1 = arith.constant 0 : index
    %c0_2 = arith.constant 0 : index
    %7 = vector.load %arg7[%c0_1, %c0_2] : memref<128x128xbf16, #tpu.memory_space<vmem>>, vector<128x128xbf16>
    %cst = arith.constant dense<0.000000e+00> : vector<128x128xf32>
    %8 = tpu.matmul %7, %6, %cst {dimension_numbers = #tpu.dot_dimension_numbers<[1], [1], [0], [0], [0, 0, 1, 0], [], []>} : vector<128x128xbf16>, vector<128x128xbf16>, vector<128x128xf32> -> vector<128x128xf32>
    %c128_i32_3 = arith.constant 128 : i32
    %9 = arith.muli %arg0, %c128_i32_3 : i32
    %10 = tpu.iota {dimensions = array<i32: 0>} : vector<128x1xi32>
    %11 = vector.broadcast %9 : i32 to vector<128x1xi32>
    %12 = arith.addi %11, %10 : vector<128x1xi32>
    %c0_4 = arith.constant 0 : index
    %c0_5 = arith.constant 0 : index
    %13 = vector.load %arg4[%c0_4, %c0_5] : memref<128x1xi32, #tpu.memory_space<vmem>>, vector<128x1xi32>
    %c0_6 = arith.constant 0 : index
    %c0_7 = arith.constant 0 : index
    %14 = vector.load %arg5[%c0_6, %c0_7] : memref<1x128xi32, #tpu.memory_space<vmem>>, vector<1x128xi32>
    %c128_i32_8 = arith.constant 128 : i32
    %15 = arith.muli %arg1, %c128_i32_8 : i32
    %c0_i32_9 = arith.constant 0 : i32
    %16 = arith.addi %15, %c0_i32_9 : i32
    %17 = tpu.iota {dimensions = array<i32: 1>} : vector<1x128xi32>
    %18 = vector.broadcast %16 : i32 to vector<1x128xi32>
    %19 = arith.addi %18, %17 : vector<1x128xi32>
    %20 = vector.broadcast %12 : vector<128x1xi32> to vector<128x128xi32>
    %21 = vector.broadcast %19 : vector<1x128xi32> to vector<128x128xi32>
    %22 = arith.cmpi eq, %20, %21 : vector<128x128xi32>
    %23 = vector.broadcast %13 : vector<128x1xi32> to vector<128x128xi32>
    %24 = vector.broadcast %14 : vector<1x128xi32> to vector<128x128xi32>
    %25 = arith.cmpi eq, %23, %24 : vector<128x128xi32>
    %cst_10 = arith.constant dense<true> : vector<128x128xi1>
    %26 = arith.xori %22, %cst_10 : vector<128x128xi1>
    %27 = arith.andi %25, %26 : vector<128x128xi1>
    %c8_i32 = arith.constant 8 : i32
    %28 = vector.broadcast %c8_i32 : i32 to vector<1x128xi32>
    %29 = arith.cmpi slt, %19, %28 : vector<1x128xi32>
    %30 = vector.broadcast %29 : vector<1x128xi1> to vector<128x128xi1>
    %31 = arith.andi %27, %30 : vector<128x128xi1>
    %cst_11 = arith.constant dense<true> : vector<1x128xi1>
    %32 = arith.xori %29, %cst_11 : vector<1x128xi1>
    %33 = vector.broadcast %32 : vector<1x128xi1> to vector<128x128xi1>
    %34 = arith.ori %22, %33 : vector<128x128xi1>
    %cst_12 = arith.constant -1.000000e+30 : f32
    %35 = vector.shape_cast %29 : vector<1x128xi1> to vector<1x128xi1>
    %36 = vector.broadcast %35 : vector<1x128xi1> to vector<128x128xi1>
    %37 = vector.broadcast %cst_12 : f32 to vector<128x128xf32>
    %38 = arith.select %36, %8, %37 : vector<128x128xi1>, vector<128x128xf32>
    %c0_13 = arith.constant 0 : index
    %c0_14 = arith.constant 0 : index
    %39 = vector.load %arg10[%c0_13, %c0_14] : memref<128x128xf32, #tpu.memory_space<vmem>>, vector<128x128xf32>
    %cst_15 = arith.constant 0.000000e+00 : f32
    %40 = vector.broadcast %cst_15 : f32 to vector<128x128xf32>
    %41 = arith.select %31, %8, %40 : vector<128x128xi1>, vector<128x128xf32>
    %42 = arith.addf %39, %41 : vector<128x128xf32>
    %c0_16 = arith.constant 0 : index
    %c0_17 = arith.constant 0 : index
    %43 = vector.load %arg10[%c0_16, %c0_17] : memref<128x128xf32, #tpu.memory_space<vmem>>, vector<128x128xf32>
    tpu.vector_store %arg10[%c0_16, %c0_17], %42 {strides = array<i32>} : memref<128x128xf32, #tpu.memory_space<vmem>>, vector<128x128xf32>,
    %c0_18 = arith.constant 0 : index
    %c0_19 = arith.constant 0 : index
    %44 = vector.load %arg11[%c0_18, %c0_19] : memref<128x128xf32, #tpu.memory_space<vmem>>, vector<128x128xf32>
    %cst_20 = arith.constant 1.000000e+00 : f32
    %cst_21 = arith.constant 0.000000e+00 : f32
    %45 = vector.broadcast %cst_20 : f32 to vector<128x128xf32>
    %46 = vector.broadcast %cst_21 : f32 to vector<128x128xf32>
    %47 = arith.select %31, %45, %46 : vector<128x128xi1>, vector<128x128xf32>
    %48 = arith.addf %44, %47 : vector<128x128xf32>
    %c0_22 = arith.constant 0 : index
    %c0_23 = arith.constant 0 : index
    %49 = vector.load %arg11[%c0_22, %c0_23] : memref<128x128xf32, #tpu.memory_space<vmem>>, vector<128x128xf32>
    tpu.vector_store %arg11[%c0_22, %c0_23], %48 {strides = array<i32>} : memref<128x128xf32, #tpu.memory_space<vmem>>, vector<128x128xf32>,
    %c0_24 = arith.constant 0 : index
    %c0_25 = arith.constant 0 : index
    %50 = vector.load %arg8[%c0_24, %c0_25] : memref<128x128xf32, #tpu.memory_space<vmem>>, vector<128x128xf32>
    %51 = arith.maximumf %50, %38 : vector<128x128xf32>
    %52 = arith.subf %8, %51 : vector<128x128xf32>
    %53 = math.exp %52 : vector<128x128xf32>
    %cst_26 = arith.constant 0.000000e+00 : f32
    %54 = vector.broadcast %cst_26 : f32 to vector<128x128xf32>
    %55 = arith.select %34, %54, %53 : vector<128x128xi1>, vector<128x128xf32>
    %c0_27 = arith.constant 0 : index
    %c0_28 = arith.constant 0 : index
    %56 = vector.load %arg9[%c0_27, %c0_28] : memref<128x128xf32, #tpu.memory_space<vmem>>, vector<128x128xf32>
    %57 = arith.subf %50, %51 : vector<128x128xf32>
    %58 = math.exp %57 : vector<128x128xf32>
    %59 = arith.mulf %56, %58 : vector<128x128xf32>
    %60 = arith.addf %59, %55 : vector<128x128xf32>
    %c0_29 = arith.constant 0 : index
    %c0_30 = arith.constant 0 : index
    %61 = vector.load %arg9[%c0_29, %c0_30] : memref<128x128xf32, #tpu.memory_space<vmem>>, vector<128x128xf32>
    tpu.vector_store %arg9[%c0_29, %c0_30], %60 {strides = array<i32>} : memref<128x128xf32, #tpu.memory_space<vmem>>, vector<128x128xf32>,
    %c0_31 = arith.constant 0 : index
    %c0_32 = arith.constant 0 : index
    %62 = vector.load %arg8[%c0_31, %c0_32] : memref<128x128xf32, #tpu.memory_space<vmem>>, vector<128x128xf32>
    tpu.vector_store %arg8[%c0_31, %c0_32], %51 {strides = array<i32>} : memref<128x128xf32, #tpu.memory_space<vmem>>, vector<128x128xf32>,
    %c0_i32_33 = arith.constant 0 : i32
    %63 = arith.cmpi eq, %arg1, %c0_i32_33 : i32
    %64 = arith.extui %63 : i1 to i32
    %c0_i32_34 = arith.constant 0 : i32
    %65 = arith.cmpi ne, %64, %c0_i32_34 : i32
    scf.if %65 {
      %c0_35 = arith.constant 0 : index
      %c0_36 = arith.constant 0 : index
      %66 = vector.load %arg8[%c0_35, %c0_36] : memref<128x128xf32, #tpu.memory_space<vmem>>, vector<128x128xf32>
      %cst_37 = arith.constant dense<0xFF800000> : vector<128xf32>
      %67 = vector.multi_reduction <maximumf>, %66, %cst_37 [1] : vector<128x128xf32> to vector<128xf32>
      %68 = vector.shape_cast %67 : vector<128xf32> to vector<128x1xf32>
      %c0_38 = arith.constant 0 : index
      %c0_39 = arith.constant 0 : index
      %69 = vector.load %arg9[%c0_38, %c0_39] : memref<128x128xf32, #tpu.memory_space<vmem>>, vector<128x128xf32>
      %70 = vector.broadcast %68 : vector<128x1xf32> to vector<128x128xf32>
      %71 = arith.subf %66, %70 : vector<128x128xf32>
      %72 = math.exp %71 : vector<128x128xf32>
      %73 = arith.mulf %69, %72 : vector<128x128xf32>
      %cst_40 = arith.constant dense<0.000000e+00> : vector<128xf32>
      %74 = vector.multi_reduction <add>, %73, %cst_40 [1] : vector<128x128xf32> to vector<128xf32>
      %75 = vector.shape_cast %74 : vector<128xf32> to vector<128x1xf32>
      %c0_41 = arith.constant 0 : index
      %c0_42 = arith.constant 0 : index
      %76 = vector.load %arg10[%c0_41, %c0_42] : memref<128x128xf32, #tpu.memory_space<vmem>>, vector<128x128xf32>
      %cst_43 = arith.constant dense<0.000000e+00> : vector<128xf32>
      %77 = vector.multi_reduction <add>, %76, %cst_43 [1] : vector<128x128xf32> to vector<128xf32>
      %78 = vector.shape_cast %77 : vector<128xf32> to vector<128x1xf32>
      %c0_44 = arith.constant 0 : index
      %c0_45 = arith.constant 0 : index
      %79 = vector.load %arg11[%c0_44, %c0_45] : memref<128x128xf32, #tpu.memory_space<vmem>>, vector<128x128xf32>
      %cst_46 = arith.constant dense<0.000000e+00> : vector<128xf32>
      %80 = vector.multi_reduction <add>, %79, %cst_46 [1] : vector<128x128xf32> to vector<128xf32>
      %81 = vector.shape_cast %80 : vector<128xf32> to vector<128x1xf32>
      %cst_47 = arith.constant 9.99999997E-7 : f32
      %82 = vector.broadcast %cst_47 : f32 to vector<128x1xf32>
      %83 = arith.addf %75, %82 : vector<128x1xf32>
      %84 = math.log %83 : vector<128x1xf32>
      %85 = arith.addf %68, %84 : vector<128x1xf32>
      %86 = arith.mulf %81, %85 : vector<128x1xf32>
      %87 = arith.subf %78, %86 : vector<128x1xf32>
      %cst_48 = arith.constant 9.99999997E-7 : f32
      %88 = vector.broadcast %cst_48 : f32 to vector<128x1xf32>
      %89 = arith.cmpf olt, %81, %88 : vector<128x1xf32>
      %cst_49 = arith.constant 1.000000e+00 : f32
      %90 = vector.broadcast %cst_49 : f32 to vector<128x1xf32>
      %91 = arith.select %89, %90, %81 : vector<128x1xi1>, vector<128x1xf32>
      %cst_50 = arith.constant -1.000000e+00 : f32
      %92 = vector.broadcast %cst_50 : f32 to vector<128x1xf32>
      %93 = arith.mulf %92, %87 : vector<128x1xf32>
      %94 = tpu.reciprocal %91 : vector<128x1xf32> -> vector<128x1xf32>
      %95 = arith.mulf %93, %94 : vector<128x1xf32>
      %c0_51 = arith.constant 0 : index
      %c0_52 = arith.constant 0 : index
      %96 = vector.load %arg6[%c0_51, %c0_52] : memref<128x1xf32, #tpu.memory_space<vmem>>, vector<128x1xf32>
      tpu.vector_store %arg6[%c0_51, %c0_52], %95 {strides = array<i32>} : memref<128x1xf32, #tpu.memory_space<vmem>>, vector<128x1xf32>,
    } else {
    }
    return
  }
  func.func @transform_0(%arg0: i32, %arg1: i32) -> (i32, i32) {
    %c0_i32 = arith.constant 0 : i32
    %c0_i32_0 = arith.constant 0 : i32
    return %arg0, %c0_i32 : i32, i32
  }
  func.func @transform_1(%arg0: i32, %arg1: i32) -> (i32, i32) {
    %c0_i32 = arith.constant 0 : i32
    %c0_i32_0 = arith.constant 0 : i32
    %c0_i32_1 = arith.constant 0 : i32
    return %c0_i32, %c0_i32_0 : i32, i32
  }
  func.func @transform_2(%arg0: i32, %arg1: i32) -> (i32, i32) {
    %c0_i32 = arith.constant 0 : i32
    %c0_i32_0 = arith.constant 0 : i32
    return %arg0, %c0_i32 : i32, i32
  }
  func.func @transform_3(%arg0: i32, %arg1: i32) -> (i32, i32) {
    %c0_i32 = arith.constant 0 : i32
    %c0_i32_0 = arith.constant 0 : i32
    return %c0_i32, %arg1 : i32, i32
  }
  func.func @transform_4(%arg0: i32, %arg1: i32) -> (i32, i32) {
    %c0_i32 = arith.constant 0 : i32
    %c0_i32_0 = arith.constant 0 : i32
    return %arg0, %c0_i32 : i32, i32
  }
}

</mosaic_0001>

<bundles_post_ra>
// kernel: tpu_custom_call.1
= control target key start
LH: loop header
LB: loop body
LE: loop exit
PB: predicated region body
PF: predicated region fallthrough
CT: control target
= control target key end

     0   :  { %v1860_v1 = vmov 0   ;;  %vm3147_vm3 = vmmov 1   ;;  %s3136_s1 = inlined_call_operand.vmem [shape: bf16[128,128], index: 1, kind: input, shape index: {}]   ;;  %s3137_s0 = inlined_call_operand.vmem [shape: bf16[128,128], index: 0, kind: input, shape index: {}]   ;;  %s3138_s2 = inlined_call_operand.vmem [shape: s32[128,1], index: 2, kind: input, shape index: {}]   ;;  %s3139_s3 = inlined_call_operand.vmem [shape: s32[1,128], index: 3, kind: input, shape index: {}]   ;;  %s3140_s4 = inlined_call_operand.vmem [shape: f32[128,1], index: 4, kind: output, shape index: {}]  }
   0x1   :  { %v1684_v0 = vld [vmem:[%s3136_s1 + $0x38] sm:$0xff]   ;;  %1683 = vset.pattern.permute.xlu1 %v1860_v1  ;;  %1682 = vset.pattern.permute.xlu0 %v1860_v1  ;;  %v1685_v2 = vld [vmem:[%s3136_s1 + $0x30] sm:$0xff]   ;;  %v1897_v3 = vld [vmem:[%s3136_s1 + $0x28] sm:$0xff]  }
   0x2   :  { %1631 = vmatprep.subr.bf16.mxu0 %v1684_v0  ;;  %1663 = vmatprep.subr.bf16.mxu1 %v1684_v0  ;;  %v1530_v4 = vld [vmem:[%s3137_s0] sm:$0xff]   ;;  %v1601_v6 = vld [vmem:[%s3137_s0 + $0x8] sm:$0xff]   ;;  %v1602_v12 = vld [vmem:[%s3137_s0 + $0x10] sm:$0xff]  }
   0x3   :  { %1632 = vmatpush3.bf16.xpose.msra.mxu0 %v1684_v0  ;;  %1671 = vmatpush3.bf16.xpose.msra.mxu1 %v1684_v0  ;;  %v1604_v5 = vld [vmem:[%s3137_s0 + $0x20] sm:$0xff]   ;;  %v1531_v7 = vunpack.c.l.bf16 %v1530_v4  ;;  %v1532_v8 = vunpack.c.h.bf16 %v1530_v4  ;;  %v1605_v11 = vld [vmem:[%s3137_s0 + $0x28] sm:$0xff]   ;;  %v1535_v13 = vunpack.c.l.bf16 %v1601_v6  ;;  %v1536_v14 = vunpack.c.h.bf16 %v1601_v6  ;;  %v1606_v17 = vld [vmem:[%s3137_s0 + $0x30] sm:$0xff]  }
   0x4   :  { %1633 = vmatprep.subr.bf16.mxu0 %v1685_v2  ;;  %1664 = vmatprep.subr.bf16.mxu1 %v1685_v2  ;;  %v1547_v9 = vunpack.c.l.bf16 %v1604_v5  ;;  %v1548_v10 = vunpack.c.h.bf16 %v1604_v5  ;;  %v1551_v15 = vunpack.c.l.bf16 %v1605_v11  ;;  %v1552_v16 = vunpack.c.h.bf16 %v1605_v11  ;;  %v1603_v18 = vld [vmem:[%s3137_s0 + $0x18] sm:$0xff]   ;;  %v481_v19 = vld [vmem:[%s3138_s2 + $0x10] sm:$0xff]  ;;  %v479_v37 = vld [vmem:[%s3138_s2] sm:$0xff] }
   0x5   :  { %v54_v20 = vmul.f32 14.285714, %v1531_v7  ;;  %v55_v21 = vmul.f32 14.285714, %v1532_v8  ;;  %v1539_v23 = vunpack.c.l.bf16 %v1602_v12  ;;  %v1607_v24 = vld [vmem:[%s3137_s0 + $0x38] sm:$0xff]   ;;  %v1540_v28 = vunpack.c.h.bf16 %v1602_v12  ;;  %523 = vperm.xlu1 %1683, %v481_v19   ;;  %517 = vperm.xlu0 %1682, %v479_v37   ;;  %v1687_v43 = vld [vmem:[%s3136_s1 + $0x20] sm:$0xff]  }
   0x6   :  { %v62_v22 = vmul.f32 14.285714, %v1547_v9  ;;  %v63_v25 = vmul.f32 14.285714, %v1548_v10  ;;  %v56_v26 = vmul.f32 14.285714, %v1535_v13  ;;  %v1555_v36 = vunpack.c.l.bf16 %v1606_v17 }
   0x7   :  { %v57_v27 = vmul.f32 14.285714, %v1536_v14  ;;  %v1564_v29 = vpack.c.bf16 %v55_v21, %v54_v20  ;;  %v64_v30 = vmul.f32 14.285714, %v1551_v15  ;;  %v65_v31 = vmul.f32 14.285714, %v1552_v16 }
   0x8   :  { %v58_v32 = vmul.f32 14.285714, %v1539_v23  ;;  %v1584_v33 = vpack.c.bf16 %v63_v25, %v62_v22  ;;  %v59_v35 = vmul.f32 14.285714, %v1540_v28  ;;  %v482_v38 = vld [vmem:[%s3138_s2 + $0x18] sm:$0xff]  ;;  %v1556_v40 = vunpack.c.h.bf16 %v1606_v17  ;;  %v480_v53 = vld [vmem:[%s3138_s2 + $0x8] sm:$0xff] }
   0x9   :  { %v1569_v34 = vpack.c.bf16 %v57_v27, %v56_v26  ;;  %1565 = vst [vmem:[#allocation2] sm:$0xff] %v1564_v29   ;;  %v1589_v39 = vpack.c.bf16 %v65_v31, %v64_v30  ;;  %v1543_v41 = vunpack.c.l.bf16 %v1603_v18  ;;  %v1544_v42 = vunpack.c.h.bf16 %v1603_v18  ;;  %526 = vperm.xlu1 %1683, %v482_v38   ;;  %v485_v54 = vld [vmem:[%s3138_s2 + $0x30] sm:$0xff]  ;;  %520 = vperm.xlu0 %1682, %v480_v53   ;;  %v483_v58 = vld [vmem:[%s3138_s2 + $0x20] sm:$0xff]  ;;  %v486_v59 = vld [vmem:[%s3138_s2 + $0x38] sm:$0xff] }
   0xa   :  { %1611 = vst [vmem:[#allocation2 + $0x20] sm:$0xff] %v1584_v33   ;;  %v1574_v44 = vpack.c.bf16 %v59_v35, %v58_v32  ;;  %v66_v45 = vmul.f32 14.285714, %v1555_v36  ;;  %v1559_v46 = vunpack.c.l.bf16 %v1607_v24  ;;  %v1560_v47 = vunpack.c.h.bf16 %v1607_v24  ;;  %v1688_v62 = vld [vmem:[%s3136_s1 + $0x18] sm:$0xff]   ;;  %v484_v63 = vld [vmem:[%s3138_s2 + $0x28] sm:$0xff]  ;;  %v487_v1 = vld [vmem:[%s3138_s2 + $0x40] sm:$0xff] }
   0xb   :  { %1634 = vmatpush3.bf16.xpose.msra.mxu0 %v1685_v2  ;;  %1672 = vmatpush3.bf16.xpose.msra.mxu1 %v1685_v2  ;;  %1608 = vst [vmem:[#allocation2 + $0x8] sm:$0xff] %v1569_v34   ;;  %1612 = vst [vmem:[#allocation2 + $0x28] sm:$0xff] %v1589_v39   ;;  %v67_v48 = vmul.f32 14.285714, %v1556_v40  ;;  %v60_v49 = vmul.f32 14.285714, %v1543_v41  ;;  %v445_v19 = vlaneseq }
   0xc   :  { %1635 = vmatprep.subr.bf16.mxu0 %v1897_v3  ;;  %1665 = vmatprep.subr.bf16.mxu1 %v1897_v3  ;;  %v61_v50 = vmul.f32 14.285714, %v1544_v42  ;;  %1609 = vst [vmem:[#allocation2 + $0x10] sm:$0xff] %v1574_v44   ;;  %v68_v51 = vmul.f32 14.285714, %v1559_v46  ;;  %v488_v0 = vld [vmem:[%s3138_s2 + $0x48] sm:$0xff] }
   0xd   :  { %v69_v52 = vmul.f32 14.285714, %v1560_v47  ;;  %v1594_v55 = vpack.c.bf16 %v67_v48, %v66_v45  ;;  %535 = vperm.xlu1 %1683, %v485_v54   ;;  %529 = vperm.xlu0 %1682, %v483_v58   ;;  %v490_v2 = vld [vmem:[%s3138_s2 + $0x58] sm:$0xff]  ;;  %v489_v4 = vld [vmem:[%s3138_s2 + $0x50] sm:$0xff]  ;;  %v492_v5 = vld [vmem:[%s3138_s2 + $0x68] sm:$0xff]  ;;  %v1988_v21 = vshrl.u32 %v445_v19, 7 }
   0xe   :  { %v1579_v56 = vpack.c.bf16 %v61_v50, %v60_v49  ;;  %v491_v6 = vld [vmem:[%s3138_s2 + $0x60] sm:$0xff]  ;;  %v1690_v7 = vld [vmem:[%s3136_s1 + $0x8] sm:$0xff]   ;;  %v1997_v25 = vand.u32 127, %v445_v19  ;;  %v3240_v36 = vmov 0  ;;  %v3242_v38 = vmov 0 }
   0xf   :  { %v1599_v57 = vpack.c.bf16 %v69_v52, %v68_v51  ;;  %1613 = vst [vmem:[#allocation2 + $0x30] sm:$0xff] %v1594_v55   ;;  %v1691_v8 = vld [vmem:[%s3136_s1] sm:$0xff]   ;;  %v1995_v24 = vadd.s32 16, %v1988_v21  ;;  %v2000_v26 = vadd.s32 24, %v1988_v21  ;;  %v2005_v28 = vadd.s32 64, %v1988_v21 }
  0x10   :  { %1610 = vst [vmem:[#allocation2 + $0x18] sm:$0xff] %v1579_v56   ;;  %v1692_v60 = vld [vmem:[#allocation2] sm:$0xff]   ;;  %vm3143_vm1 = vcmp.eq.s32.totalorder %v1988_v21, %v1997_v25  ;;  %v2017_v31 = vadd.s32 88, %v1988_v21  ;;  %v2022_v32 = vadd.s32 80, %v1988_v21  ;;  %vm3155_vm12 = vcmp.lt.s32.totalorder %v1997_v25, 8 }
  0x11   :  { %1614 = vst [vmem:[#allocation2 + $0x38] sm:$0xff] %v1599_v57   ;;  %v1693_v61 = vld [vmem:[#allocation2 + $0x20] sm:$0xff]   ;;  %1647 = vmatprep.mubr.bf16.mxu0 %v1692_v60  ;;  %538 = vperm.xlu1 %1683, %v486_v59   ;;  %vm3145_vm0 = vcmp.eq.s32.totalorder %v1995_v24, %v1997_v25  ;;  %vm3141_vm2 = vcmp.eq.s32.totalorder %v2000_v26, %v1997_v25  ;;  %vm2035_vm7 = vmxor %vm3143_vm1, %vm3147_vm3  ;;  %v3244_v40 = vmov 0  ;;  %v3247_v41 = vmov 0 }
  0x12   :  { %1655 = vmatprep.mubr.bf16.mxu1 %v1693_v61  ;;  %532 = vperm.xlu0 %1682, %v484_v63   ;;  %v1694_v9 = vld [vmem:[#allocation2 + $0x8] sm:$0xff]   ;;  %v2012_v29 = vld [vmem:[%s3139_s3] ss:$0 sm:$0xff]  ;;  %vm586_vm4 = vmxor %vm3145_vm0, %vm3147_vm3  ;;  %vm3142_vm5 = vcmp.eq.s32.totalorder %v2005_v28, %v1997_v25  ;;  %vm3144_vm9 = vcmp.eq.s32.totalorder %v2017_v31, %v1997_v25  ;;  %vm3146_vm11 = vcmp.eq.s32.totalorder %v2022_v32, %v1997_v25  ;;  %v3251_v44 = vmov 0 }
  0x13   :  { %1636 = vmatpush3.bf16.xpose.msra.mxu0 %v1897_v3  ;;  %1673 = vmatpush3.bf16.xpose.msra.mxu1 %v1897_v3  ;;  %v1689_v3 = vld [vmem:[%s3136_s1 + $0x10] sm:$0xff]   ;;  %v1695_v10 = vld [vmem:[#allocation2 + $0x28] sm:$0xff]   ;;  %vm2043_vm8 = vmxor %vm3141_vm2, %vm3147_vm3  ;;  %v3258_v54 = vmov 0  ;;  %v3278_v49 = vmov 0  ;;  %v2322_v57 = vadd.s32 8, %v1988_v21 }
  0x14   :  { %1637 = vmatprep.subr.bf16.mxu0 %v1687_v43  ;;  %1666 = vmatprep.subr.bf16.mxu1 %v1687_v43  ;;  %v1696_v11 = vld [vmem:[#allocation2 + $0x10] sm:$0xff]   ;;  %vm2055_vm10 = vmxor %vm3142_vm5, %vm3147_vm3 }
  0x15   :  { %544 = vperm.xlu1 %1683, %v488_v0   ;;  %v3241_v36 = vsel %vm2055_vm10, 4294967295, %v3240_v36  ;;  %vm595_vm15 = vmxor %vm3144_vm9, %vm3147_vm3 }
  0x16   :  { %541 = vperm.xlu0 %1682, %v487_v1   ;;  %v1697_v12 = vld [vmem:[#allocation2 + $0x30] sm:$0xff]   ;;  %vm594_vm5 = vmxor %vm3146_vm11, %vm3147_vm3 }
  0x17   :  { %v1698_v13 = vld [vmem:[#allocation2 + $0x18] sm:$0xff]  }
  0x18   :  { %v1699_v14 = vld [vmem:[#allocation2 + $0x38] sm:$0xff]  }
  0x19   :  { %550 = vperm.xlu1 %1683, %v490_v2  }
  0x1a   :  { %547 = vperm.xlu0 %1682, %v489_v4  }
  0x1b   :  { %1638 = vmatpush3.bf16.xpose.msra.mxu0 %v1687_v43  ;;  %1674 = vmatpush3.bf16.xpose.msra.mxu1 %v1687_v43 }
  0x1c   :  { %1639 = vmatprep.subr.bf16.mxu0 %v1688_v62  ;;  %1667 = vmatprep.subr.bf16.mxu1 %v1688_v62 }
  0x1d   :  { %556 = vperm.xlu1 %1683, %v492_v5  }
  0x1e   :  { %553 = vperm.xlu0 %1682, %v491_v6  }
  0x23   :  { %1640 = vmatpush3.bf16.xpose.msra.mxu0 %v1688_v62  ;;  %1675 = vmatpush3.bf16.xpose.msra.mxu1 %v1688_v62 }
  0x24   :  { %1641 = vmatprep.subr.bf16.mxu0 %v1689_v3  ;;  %1668 = vmatprep.subr.bf16.mxu1 %v1689_v3 }
  0x2b   :  { %1642 = vmatpush3.bf16.xpose.msra.mxu0 %v1689_v3  ;;  %1676 = vmatpush3.bf16.xpose.msra.mxu1 %v1689_v3 }
  0x2c   :  { %1643 = vmatprep.subr.bf16.mxu0 %v1690_v7  ;;  %1669 = vmatprep.subr.bf16.mxu1 %v1690_v7 }
  0x33   :  { %1644 = vmatpush3.bf16.xpose.msra.mxu0 %v1690_v7  ;;  %1677 = vmatpush3.bf16.xpose.msra.mxu1 %v1690_v7 }
  0x34   :  { %1645 = vmatprep.subr.bf16.mxu0 %v1691_v8  ;;  %1670 = vmatprep.subr.bf16.mxu1 %v1691_v8 }
  0x3b   :  { %1646 = vmatpush3.bf16.xpose.msra.mxu0 %v1691_v8  ;;  %1678 = vmatpush3.bf16.xpose.msra.mxu1 %v1691_v8 }
  0x42   :  { %1648 = vmatmul.mubr.bf16.vlgmr.msra.gmra.mxu0 %v1694_v9  ;;  %1656 = vmatmul.mubr.bf16.vlgmr.msra.gmra.mxu1 %v1695_v10 }
  0x43   :  { %1651 = vmatprep.mubr.bf16.mxu0 %v1696_v11  ;;  %1659 = vmatprep.mubr.bf16.mxu1 %v1697_v12 }
  0x4a   :  { %1652 = vmatmul.mubr.bf16.gmra.mxu0 %v1698_v13  ;;  %1660 = vmatmul.mubr.bf16.gmra.mxu1 %v1699_v14 }
  0x80   :  { %v518_v15 = vpop.permute.xlu0 %517  ;;  %v524_v16 = vpop.permute.xlu1 %523 }
  0x81   :  { %vm570_vm6 = vcmp.eq.s32.totalorder %v524_v16, %v2012_v29  ;;  %vm568_vm14 = vcmp.eq.s32.totalorder %v518_v15, %v2012_v29 }
  0x82   :  { %vm602_vm13 = vmand %vm570_vm6, %vm586_vm4 }
  0x83   :  { %vm2075_vm4 = vmand %vm602_vm13, %vm3155_vm12  ;;  %vm3246_vm13 = vnez %v3241_v36 }
  0x84   :  { %v1984_v17 = vpop.permute.xlu0 %520  ;;  %v527_v18 = vpop.permute.xlu1 %526  ;;  %v3243_v38 = vsel %vm2075_vm4, 4294967295, %v3242_v38  ;;  %vm600_vm6 = vmand %vm568_vm14, %vm2035_vm7 }
  0x85   :  { %vm571_vm2 = vcmp.eq.s32.totalorder %v527_v18, %v2012_v29  ;;  %vm2087_vm3 = vmand %vm600_vm6, %vm3155_vm12  ;;  %vm3280_vm6 = vcmp.eq.s32.totalorder %v2022_v32, %v1997_v25  ;;  %v3284_v32 = vmov 0 }
  0x86   :  { %vm603_vm9 = vmand %vm571_vm2, %vm2043_vm8  ;;  %v3245_v40 = vsel %vm2087_vm3, 4294967295, %v3244_v40 }
  0x88   :  { %v1986_v20 = vpop.permute.xlu0 %529  ;;  %v1990_v22 = vpop.permute.xlu1 %535 }
  0x8c   :  { %v2002_v27 = vpop.permute.xlu1 %538 }
  0x8d   :  { %v1992_v23 = vpop.permute.xlu0 %532 }
  0x90   :  { %v2047_v35 = vpop.permute.xlu1 %544 }
  0x91   :  { %v542_v30 = vpop.permute.xlu0 %541 }
  0x92   :  { %vm576_vm0 = vcmp.eq.s32.totalorder %v542_v30, %v2012_v29 }
  0x93   :  { %vm608_vm4 = vmand %vm576_vm0, %vm3246_vm13 }
  0x94   :  { %v551_v39 = vpop.permute.xlu1 %550  ;;  %vm2117_vm0 = vmand %vm603_vm9, %vm3155_vm12  ;;  %vm3270_vm9 = vmmov 1  }
  0x95   :  { %v548_v37 = vpop.permute.xlu0 %547  ;;  %vm579_vm11 = vcmp.eq.s32.totalorder %v551_v39, %v2012_v29 }
  0x96   :  { %vm578_vm1 = vcmp.eq.s32.totalorder %v548_v37, %v2012_v29  ;;  %vm611_vm2 = vmand %vm579_vm11, %vm595_vm15  ;;  %vm3274_vm11 = vcmp.eq.s32.totalorder %v1995_v24, %v1997_v25  ;;  %vm3277_vm15 = vcmp.eq.s32.totalorder %v1988_v21, %v1997_v25  ;;  %v2298_v24 = vadd.s32 72, %v1988_v21 }
  0x97   :  { %vm610_vm10 = vmand %vm578_vm1, %vm594_vm5  ;;  %vm3256_vm5 = vnez %v3243_v38 }
  0x98   :  { %vm2095_vm7 = vmand %vm610_vm10, %vm3155_vm12 }
  0x99   :  { %v3248_v41 = vsel %vm2095_vm7, 4294967295, %v3247_v41  ;;  %vm2105_vm1 = vmand %vm608_vm4, %vm3155_vm12 }
  0x9a   :  { %3249 = vst [vmem:[#allocation7_spill] sm:$0xff] %v3248_v41  ;;  %v3252_v44 = vsel %vm2105_vm1, 4294967295, %v3251_v44  ;;  %vm2137_vm8 = vmand %vm611_vm2, %vm3155_vm12  ;;  %vm3283_vm2 = vcmp.eq.s32.totalorder %v2005_v28, %v1997_v25  ;;  %v3287_v28 = vmov 0 }
  0x9b   :  { %3253 = vst [vmem:[#allocation9_spill] sm:$0xff] %v3252_v44  ;;  %v3259_v54 = vsel %vm2137_vm8, 4294967295, %v3258_v54  ;;  %vm2249_vm10 = vmxor %vm3155_vm12, %vm3270_vm9 }
  0x9c   :  { %3260 = vst [vmem:[#allocation11_spill] sm:$0xff] %v3259_v54  ;;  %vm2278_vm14 = vmor %vm3274_vm11, %vm2249_vm10 }
  0x9d   :  { %vm2293_vm4 = vmor %vm3277_vm15, %vm2249_vm10  ;;  %vm3286_vm15 = vcmp.eq.s32.totalorder %v2017_v31, %v1997_v25  ;;  %v3291_v31 = vmov 0 }
  0x9e   :  { %v3279_v49 = vsel %vm2293_vm4, 4294967295, %v3278_v49  ;;  %vm2308_vm13 = vmor %vm3280_vm6, %vm2249_vm10  ;;  %vm3162_vm4 = vcmp.eq.s32.totalorder %v2322_v57, %v1997_v25 }
  0x9f   :  { %vm2329_vm11 = vmor %vm3283_vm2, %vm2249_vm10  ;;  %vm3290_vm2 = vcmp.eq.s32.totalorder %v2000_v26, %v1997_v25  ;;  %v3295_v26 = vmov 0 }
  0xa0   :  { %v3285_v32 = vsel %vm2329_vm11, 4294967295, %v3284_v32  ;;  %vm2348_vm6 = vmor %vm3286_vm15, %vm2249_vm10 }
  0xa1   :  { %v3288_v28 = vsel %vm2348_vm6, 4294967295, %v3287_v28  ;;  %vm2366_vm15 = vmor %vm3290_vm2, %vm2249_vm10 }
  0xa2   :  { %3289 = vst [vmem:[#allocation22_spill] sm:$0xff] %v3288_v28  ;;  %v3292_v31 = vsel %vm2366_vm15, 4294967295, %v3291_v31  ;;  %vm2400_vm11 = vmor %vm3162_vm4, %vm2249_vm10  ;;  %v3330_v28 = vmov 0 }
  0xa3   :  { %3293 = vst [vmem:[#allocation23_spill] sm:$0xff] %v3292_v31 }
 0x102   :  { %v2099_v42 = vpop.f32.mrf.mxu0  ;;  %v2101_v43 = vpop.f32.mrf.mxu1 }
 0x103   :  { %3250 = vst [vmem:[#allocation8_spill] sm:$0xff] %v2101_v43  ;;  %v656_v45 = vsel %vm3155_vm12, %v2099_v42, -1e+30  ;;  %v664_v46 = vsel %vm3155_vm12, %v2101_v43, -1e+30 }
 0x104   :  { %v2127_v50 = vmax.f32 %v656_v45, -1e+30  ;;  %v2129_v51 = vmax.f32 %v664_v46, -1e+30  ;;  %v2131_v52 = vpop.f32.mrf.mxu0  ;;  %v2133_v53 = vpop.f32.mrf.mxu1 }
 0x105   :  { %3257 = vst [vmem:[#allocation10_spill] sm:$0xff] %v2133_v53  ;;  %v654_v55 = vsel %vm3155_vm12, %v2131_v52, -1e+30  ;;  %v662_v56 = vsel %vm3155_vm12, %v2133_v53, -1e+30 }
 0x106   :  { %v832_v59 = vsub.f32 %v2099_v42, %v2127_v50  ;;  %v840_v60 = vsub.f32 %v2101_v43, %v2129_v51  ;;  %v2157_v61 = vmax.f32 %v654_v55, -1e+30  ;;  %v2159_v62 = vmax.f32 %v662_v56, -1e+30  ;;  %v2161_v63 = vpop.f32.mrf.mxu1  ;;  %1045 = vmax.xlane.f32.xlu0 %v2127_v50  ;;  %v2164_v0 = vpop.f32.mrf.mxu0 }
 0x107   :  { %3261 = vst [vmem:[#allocation12_spill] sm:$0xff] %v2161_v63  ;;  %v665_v1 = vsel %vm3155_vm12, %v2161_v63, -1e+30  ;;  %v657_v2 = vsel %vm3155_vm12, %v2164_v0, -1e+30 }
 0x108   :  { %v850_v5 = vmul.f32 1.442695, %v832_v59  ;;  %v866_v6 = vmul.f32 1.442695, %v840_v60  ;;  %v830_v7 = vsub.f32 %v2131_v52, %v2157_v61  ;;  %v838_v8 = vsub.f32 %v2133_v53, %v2159_v62  ;;  %v2182_v9 = vpop.f32.mrf.mxu1  ;;  %1041 = vmax.xlane.f32.xlu1 %v2157_v61  ;;  %v2185_v10 = vpop.f32.mrf.mxu0 }
 0x109   :  { %3262 = vst [vmem:[#allocation13_spill] sm:$0xff] %v2182_v9  ;;  %v2187_v11 = vmax.f32 %v665_v1, -1e+30  ;;  %v2189_v12 = vmax.f32 %v657_v2, -1e+30 }
 0x10a   :  { %v663_v13 = vsel %vm3155_vm12, %v2182_v9, -1e+30  ;;  %1700 = vpow2.f32 %v850_v5  ;;  %v846_v14 = vmul.f32 1.442695, %v830_v7  ;;  %v862_v15 = vmul.f32 1.442695, %v838_v8  ;;  %v2196_v18 = vpop.f32.mrf.mxu1  ;;  %1061 = vmax.xlane.f32.xlu0 %v2129_v51  ;;  %v2199_v19 = vpop.f32.mrf.mxu0 }
 0x10b   :  { %v2194_v16 = vmax.f32 %v663_v13, -1e+30  ;;  %3263 = vst [vmem:[#allocation14_spill] sm:$0xff] %v2196_v18  ;;  %3264 = vst [vmem:[#allocation15_spill] sm:$0xff] %v2199_v19  ;;  %1702 = vpow2.f32 %v866_v6  ;;  %v841_v30 = vsub.f32 %v2161_v63, %v2187_v11  ;;  %v833_v33 = vsub.f32 %v2164_v0, %v2189_v12 }
 0x10c   :  { %v655_v34 = vsel %vm3155_vm12, %v2185_v10, -1e+30  ;;  %1704 = vpow2.f32 %v846_v14  ;;  %v2212_v39 = vpop.f32.mrf.mxu1  ;;  %1047 = vmax.xlane.f32.xlu1 %v2189_v12  ;;  %v2215_v45 = vpop.f32.mrf.mxu0  ;;  %v660_v60 = vsel %vm3155_vm12, %v2199_v19, -1e+30 }
 0x10d   :  { %v839_v36 = vsub.f32 %v2182_v9, %v2194_v16  ;;  %v2210_v37 = vmax.f32 %v655_v34, -1e+30  ;;  %3265 = vst [vmem:[#allocation16_spill] sm:$0xff] %v2212_v39  ;;  %3266 = vst [vmem:[#allocation17_spill] sm:$0xff] %v2215_v45  ;;  %1706 = vpow2.f32 %v862_v15  ;;  %v868_v46 = vmul.f32 1.442695, %v841_v30 }
 0x10e   :  { %v852_v55 = vmul.f32 1.442695, %v833_v33  ;;  %v666_v1 = vsel %vm3155_vm12, %v2212_v39, -1e+30  ;;  %v2225_v2 = vpop.f32.mrf.mxu1  ;;  %1057 = vmax.xlane.f32.xlu0 %v2159_v62  ;;  %v2228_v5 = vpop.f32.mrf.mxu0  ;;  %v2230_v6 = vmax.f32 %v660_v60, -1e+30 }
 0x10f   :  { %v864_v56 = vmul.f32 1.442695, %v839_v36  ;;  %v831_v59 = vsub.f32 %v2185_v10, %v2210_v37  ;;  %3267 = vst [vmem:[#allocation18_spill] sm:$0xff] %v2228_v5  ;;  %1708 = vpow2.f32 %v868_v46  ;;  %v2232_v7 = vmax.f32 %v666_v1, -1e+30 }
 0x110   :  { %1710 = vpow2.f32 %v852_v55  ;;  %v658_v13 = vsel %vm3155_vm12, %v2215_v45, -1e+30  ;;  %1063 = vmax.xlane.f32.xlu1 %v2187_v11  ;;  %v836_v14 = vsub.f32 %v2199_v19, %v2230_v6  ;;  %v2242_v30 = vpop.f32.mrf.mxu1  ;;  %v2244_v33 = vpop.f32.mrf.mxu0  ;;  %v3271_v34 = vmov 0 }
 0x111   :  { %v848_v8 = vmul.f32 1.442695, %v831_v59  ;;  %1712 = vpow2.f32 %v864_v56  ;;  %v842_v15 = vsub.f32 %v2212_v39, %v2232_v7  ;;  %3268 = vst [vmem:[#allocation19_spill] sm:$0xff] %v2242_v30  ;;  %3269 = vst [vmem:[#allocation20_spill] sm:$0xff] %v2244_v33  ;;  %v3272_v34 = vsel %vm2249_vm10, 4294967295, %v3271_v34 }
 0x112   :  { %3273 = vst [vmem:[#allocation21_spill] sm:$0xff] %v3272_v34  ;;  %v2253_v36 = vmax.f32 %v658_v13, -1e+30  ;;  %v661_v46 = vsel %vm3155_vm12, %v2228_v5, -1e+30  ;;  %1043 = vmax.xlane.f32.xlu0 %v2210_v37  ;;  %v453_v19 = vadd.s32 56, %v1988_v21 }
 0x113   :  { %1714 = vpow2.f32 %v848_v8  ;;  %v858_v55 = vmul.f32 1.442695, %v836_v14  ;;  %v870_v56 = vmul.f32 1.442695, %v842_v15  ;;  %v2259_v59 = vmax.f32 %v661_v46, -1e+30 }
 0x114   :  { %v668_v60 = vsel %vm3155_vm12, %v2196_v18, -1e+30  ;;  %v834_v1 = vsub.f32 %v2215_v45, %v2253_v36  ;;  %v667_v8 = vsel %vm3155_vm12, %v2242_v30, -1e+30  ;;  %v659_v13 = vsel %vm3155_vm12, %v2244_v33, -1e+30  ;;  %1059 = vmax.xlane.f32.xlu1 %v2194_v16 }
 0x115   :  { %v3275_v14 = vmov 0  ;;  %1716 = vpow2.f32 %v858_v55  ;;  %v837_v15 = vsub.f32 %v2228_v5, %v2259_v59  ;;  %v2284_v46 = vmax.f32 %v667_v8, -1e+30 }
 0x116   :  { %v3276_v14 = vsel %vm2278_vm14, 4294967295, %v3275_v14  ;;  %v2286_v4 = vmax.f32 %v659_v13, -1e+30  ;;  %1718 = vpow2.f32 %v870_v56  ;;  %v854_v55 = vmul.f32 1.442695, %v834_v1  ;;  %1053 = vmax.xlane.f32.xlu0 %v2230_v6 }
 0x117   :  { %v2301_v8 = vpop.eup %1700  ;;  %v3281_v13 = vmov 0  ;;  %v669_v58 = vsel %vm3155_vm12, %v2225_v2, -1e+30  ;;  %v860_v48 = vmul.f32 1.442695, %v837_v15  ;;  %v843_v56 = vsub.f32 %v2242_v30, %v2284_v46 }
 0x118   :  { %v3282_v13 = vsel %vm2308_vm13, 4294967295, %v3281_v13  ;;  %v835_v1 = vsub.f32 %v2244_v33, %v2286_v4  ;;  %v2319_v3 = vpop.eup %1702  ;;  %v2333_v15 = vmax.f32 %v668_v60, -1e+30  ;;  %1720 = vpow2.f32 %v854_v55  ;;  %1055 = vmax.xlane.f32.xlu1 %v2259_v59 }
 0x119   :  { %v2339_v63 = vpop.eup %1704  ;;  %v872_v39 = vmul.f32 1.442695, %v843_v56  ;;  %v2352_v60 = vmax.f32 %v669_v58, -1e+30  ;;  %1722 = vpow2.f32 %v860_v48  ;;  %v452_v48 = vadd.s32 48, %v1988_v21 }
 0x11a   :  { %v856_v9 = vmul.f32 1.442695, %v835_v1  ;;  %v2341_v43 = vpop.eup %1706  ;;  %1069 = vmax.xlane.f32.xlu0 %v2333_v15  ;;  %vm3160_vm12 = vcmp.eq.s32.totalorder %v2298_v24, %v1997_v25  ;;  %v3299_v56 = vmov 0  ;;  %v450_v30 = vadd.s32 32, %v1988_v21 }
 0x11b   :  { %1724 = vpow2.f32 %v872_v39  ;;  %vm2385_vm2 = vmor %vm3160_vm12, %vm2249_vm10  ;;  %v2390_v39 = vadd.s32 96, %v1988_v21  ;;  %v3300_v56 = vsel %vm2400_vm11, 4294967295, %v3299_v56  ;;  %vm3165_vm12 = vcmp.eq.s32.totalorder %v452_v48, %v1997_v25 }
 0x11c   :  { %v2376_v1 = vpop.eup %1708  ;;  %v3296_v26 = vsel %vm2385_vm2, 4294967295, %v3295_v26  ;;  %1726 = vpow2.f32 %v856_v9  ;;  %1071 = vmax.xlane.f32.xlu1 %v2352_v60  ;;  %3301 = vst [vmem:[#allocation27_spill] sm:$0xff] %v3300_v56  ;;  %vm2424_vm4 = vmor %vm3165_vm12, %vm2249_vm10  ;;  %v3304_v9 = vmov 0  ;;  %v2436_v33 = vadd.s32 104, %v1988_v21 }
 0x11d   :  { %3294 = vst [vmem:[#allocation24_spill] sm:$0xff] %v2376_v1  ;;  %3297 = vst [vmem:[#allocation25_spill] sm:$0xff] %v3296_v26  ;;  %v2393_v58 = vpop.eup %1710  ;;  %v3305_v9 = vsel %vm2424_vm4, 4294967295, %v3304_v9  ;;  %vm3173_vm6 = vcmp.eq.s32.totalorder %v2390_v39, %v1997_v25  ;;  %v3307_v45 = vmov 0  ;;  %vm3176_vm2 = vcmp.eq.s32.totalorder %v450_v30, %v1997_v25 }
 0x11e   :  { %3298 = vst [vmem:[#allocation26_spill] sm:$0xff] %v2393_v58  ;;  %v2407_v55 = vpop.eup %1712  ;;  %1049 = vmax.xlane.f32.xlu0 %v2253_v36  ;;  %3306 = vst [vmem:[#allocation30_spill] sm:$0xff] %v3305_v9  ;;  %v451_v26 = vadd.s32 40, %v1988_v21  ;;  %v3312_v1 = vmov 0  ;;  %v3316_v58 = vmov 0  ;;  %vm3190_vm4 = vcmp.eq.s32.totalorder %v2436_v33, %v1997_v25 }
 0x11f   :  { %3302 = vst [vmem:[#allocation28_spill] sm:$0xff] %v2407_v55  ;;  %vm2443_vm12 = vmor %vm3173_vm6, %vm2249_vm10  ;;  %vm3182_vm6 = vcmp.eq.s32.totalorder %v453_v19, %v1997_v25  ;;  %vm3337_vm14 = vcmp.eq.s32.totalorder %v453_v19, %v1997_v25 }
 0x120   :  { %v2414_v53 = vpop.eup %1714  ;;  %1051 = vmax.xlane.f32.xlu1 %v2286_v4  ;;  %v3308_v45 = vsel %vm2443_vm12, 4294967295, %v3307_v45  ;;  %vm2458_vm11 = vmor %vm3176_vm2, %vm2249_vm10  ;;  %vm3191_vm15 = vcmp.eq.s32.totalorder %v451_v26, %v1997_v25 }
 0x121   :  { %3303 = vst [vmem:[#allocation29_spill] sm:$0xff] %v2414_v53  ;;  %3309 = vst [vmem:[#allocation31_spill] sm:$0xff] %v3308_v45  ;;  %v3313_v1 = vsel %vm2458_vm11, 4294967295, %v3312_v1  ;;  %v3319_v53 = vmov 0  ;;  %v3323_v45 = vmov 0 }
 0x122   :  { %v2447_v55 = vpop.eup %1716  ;;  %1065 = vmax.xlane.f32.xlu0 %v2232_v7  ;;  %3314 = vst [vmem:[#allocation34_spill] sm:$0xff] %v3313_v1  ;;  %vm2476_vm2 = vmor %vm3182_vm6, %vm2249_vm10  ;;  %v494_v1 = vld [vmem:[%s3138_s2 + $0x78] sm:$0xff] }
 0x123   :  { %3310 = vst [vmem:[#allocation32_spill] sm:$0xff] %v2447_v55  ;;  %v2452_v5 = vpop.eup %1718  ;;  %v3317_v58 = vsel %vm2476_vm2, 4294967295, %v3316_v58  ;;  %vm2488_vm12 = vmor %vm3190_vm4, %vm2249_vm10  ;;  %vm3328_vm4 = vcmp.eq.s32.totalorder %v2322_v57, %v1997_v25 }
 0x124   :  { %3311 = vst [vmem:[#allocation33_spill] sm:$0xff] %v2452_v5  ;;  %1067 = vmax.xlane.f32.xlu1 %v2284_v46  ;;  %3318 = vst [vmem:[#allocation36_spill] sm:$0xff] %v3317_v58  ;;  %v3320_v53 = vsel %vm2488_vm12, 4294967295, %v3319_v53  ;;  %v493_v58 = vld [vmem:[%s3138_s2 + $0x70] sm:$0xff]  ;;  %vm569_vm12 = vcmp.eq.s32.totalorder %v1984_v17, %v2012_v29 }
 0x125   :  { %v2470_v56 = vpop.eup %1720  ;;  %3321 = vst [vmem:[#allocation37_spill] sm:$0xff] %v3320_v53  ;;  %vm2501_vm6 = vmor %vm3191_vm15, %vm2249_vm10  ;;  %vm3332_vm10 = vcmp.eq.s32.totalorder %v452_v48, %v1997_v25  ;;  %v3350_v48 = vmov 0 }
 0x126   :  { %3315 = vst [vmem:[#allocation35_spill] sm:$0xff] %v2470_v56  ;;  %v2495_v5 = vpop.eup %1722  ;;  %v3324_v45 = vsel %vm2501_vm6, 4294967295, %v3323_v45  ;;  %vm585_vm15 = vmxor %vm3328_vm4, %vm3270_vm9  ;;  %vm3329_vm6 = vcmp.lt.s32.totalorder %v1997_v25, 8 }
 0x127   :  { %3322 = vst [vmem:[#allocation38_spill] sm:$0xff] %v2495_v5  ;;  %3325 = vst [vmem:[#allocation39_spill] sm:$0xff] %v3324_v45  ;;  %v913_v45 = vsub.f32 -1e+30, %v2189_v12 }
 0x128   :  { %v2505_v55 = vpop.eup %1724  ;;  %vm601_vm11 = vmand %vm569_vm12, %vm585_vm15  ;;  %vm3335_vm12 = vcmp.eq.s32.totalorder %v451_v26, %v1997_v25  ;;  %vm572_vm15 = vcmp.eq.s32.totalorder %v1986_v20, %v2012_v29  ;;  %v3354_v26 = vmov 0 }
 0x129   :  { %3326 = vst [vmem:[#allocation40_spill] sm:$0xff] %v2505_v55  ;;  %v2510_v31 = vpop.eup %1726  ;;  %vm2532_vm2 = vmand %vm601_vm11, %vm3329_vm6  ;;  %vm573_vm11 = vcmp.eq.s32.totalorder %v1992_v23, %v2012_v29  ;;  %vm3336_vm6 = vcmp.eq.s32.totalorder %v450_v30, %v1997_v25 }
 0x12a   :  { %3327 = vst [vmem:[#allocation41_spill] sm:$0xff] %v2510_v31  ;;  %v3331_v28 = vsel %vm2532_vm2, 4294967295, %v3330_v28  ;;  %vm2539_vm13 = vmxor %vm3332_vm10, %vm3270_vm9 }
 0x12b   :  { %vm589_vm4 = vmxor %vm3335_vm12, %vm3270_vm9 }
 0x12c   :  { %vm588_vm10 = vmxor %vm3336_vm6, %vm3270_vm9  ;;  %vm575_vm6 = vcmp.eq.s32.totalorder %v2002_v27, %v2012_v29  ;;  %v3342_v27 = vmov 0 }
 0x12d   :  { %vm605_vm12 = vmand %vm573_vm11, %vm589_vm4  ;;  %vm3341_vm4 = vcmp.lt.s32.totalorder %v1997_v25, 8 }
 0x12e   :  { %vm604_vm8 = vmand %vm572_vm15, %vm588_vm10  ;;  %vm577_vm10 = vcmp.eq.s32.totalorder %v2047_v35, %v2012_v29 }
 0x12f   :  { %vm2582_vm11 = vmand %vm605_vm12, %vm3341_vm4 }
 0x130   :  { %v3343_v27 = vsel %vm2582_vm11, 4294967295, %v3342_v27  ;;  %vm3345_vm15 = vmmov %vm3341_vm4 }
 0x131   :  { %3344 = vst [vmem:[#allocation42_spill] sm:$0xff] %v3343_v27 }
 0x135   :  { %562 = vperm.xlu1 %1683, %v494_v1   ;;  %v3210_v1 = vmov 0.0  }
 0x136   :  { %v751_v57 = vsel %vm2532_vm2, 1.0, %v3210_v1  ;;  %v750_v17 = vsel %vm2087_vm3, 1.0, %v3210_v1  ;;  %vm591_vm2 = vmxor %vm3337_vm14, %vm3270_vm9  ;;  %v753_v23 = vsel %vm2117_vm0, 1.0, %v3210_v1  ;;  %vm3338_vm3 = vcmp.eq.s32.totalorder %v2298_v24, %v1997_v25 }
 0x137   :  { %vm2571_vm7 = vmxor %vm3338_vm3, %vm3270_vm9  ;;  %v752_v20 = vsel %vm3256_vm5, 1.0, %v3210_v1  ;;  %vm574_vm14 = vcmp.eq.s32.totalorder %v1990_v22, %v2012_v29  ;;  %v755_v19 = vsel %vm2582_vm11, 1.0, %v3210_v1  ;;  %v3346_v22 = vmov 0 }
 0x138   :  { %559 = vperm.xlu0 %1682, %v493_v58   ;;  %vm607_vm3 = vmand %vm575_vm6, %vm591_vm2  ;;  %v557_v58 = vpop.permute.xlu1 %556 }
 0x139   :  { %vm2593_vm5 = vmand %vm604_vm8, %vm3345_vm15  ;;  %vm581_vm15 = vcmp.eq.s32.totalorder %v557_v58, %v2012_v29 }
 0x13a   :  { %v3347_v22 = vsel %vm2593_vm5, 4294967295, %v3346_v22  ;;  %vm606_vm12 = vmand %vm574_vm14, %vm2539_vm13  ;;  %v754_v24 = vsel %vm2593_vm5, 1.0, %v3210_v1 }
 0x13b   :  { %3348 = vst [vmem:[#allocation43_spill] sm:$0xff] %v3347_v22  ;;  %vm3349_vm2 = vmmov %vm3341_vm4 }
 0x13c   :  { %vm2604_vm6 = vmand %vm607_vm3, %vm3349_vm2  ;;  %vm3361_vm3 = vcmp.eq.s32.totalorder %v2436_v33, %v1997_v25 }
 0x13d   :  { %v3351_v48 = vsel %vm2604_vm6, 4294967295, %v3350_v48  ;;  %vm609_vm8 = vmand %vm577_vm10, %vm2571_vm7  ;;  %v757_v35 = vsel %vm2604_vm6, 1.0, %v3210_v1  ;;  %vm3365_vm6 = vcmp.lt.s32.totalorder %v1997_v25, 8 }
 0x13e   :  { %3352 = vst [vmem:[#allocation44_spill] sm:$0xff] %v3351_v48  ;;  %vm3353_vm13 = vmmov %vm3349_vm2  ;;  %v845_v48 = vsub.f32 %v2225_v2, %v2352_v60 }
 0x13f   :  { %vm2615_vm14 = vmand %vm606_vm12, %vm3353_vm13  ;;  %vm3362_vm12 = vcmp.eq.s32.totalorder %v2390_v39, %v1997_v25  ;;  %v3366_v39 = vmov 0 }
 0x140   :  { %v3355_v26 = vsel %vm2615_vm14, 4294967295, %v3354_v26  ;;  %vm3357_vm4 = vmmov %vm3349_vm2  ;;  %v876_v5 = vmul.f32 1.442695, %v845_v48  ;;  %v2718_v48 = vadd.s32 112, %v1988_v21 }
 0x141   :  { %3356 = vst [vmem:[#allocation45_spill] sm:$0xff] %v3355_v26  ;;  %vm2624_vm7 = vmand %vm609_vm8, %vm3357_vm4  ;;  %vm3363_vm4 = vnez %v3259_v54  ;;  %v920_v54 = vsub.f32 -1e+30, %v2129_v51  ;;  %v918_v26 = vsub.f32 -1e+30, %v2159_v62 }
 0x142   :  { %v759_v30 = vsel %vm2624_vm7, 1.0, %v3210_v1  ;;  %vm597_vm10 = vmxor %vm3361_vm3, %vm3270_vm9  ;;  %v761_v33 = vsel %vm3363_vm4, 1.0, %v3210_v1 }
 0x143   :  { %vm596_vm2 = vmxor %vm3362_vm12, %vm3270_vm9  ;;  %v946_v27 = vmul.f32 1.442695, %v920_v54  ;;  %v2710_v54 = vadd.s32 120, %v1988_v21 }
 0x144   :  { %vm613_vm13 = vmand %vm581_vm15, %vm597_vm10 }
 0x145   :  { %vm3369_vm10 = vmmov %vm3365_vm6 }
 0x157   :  { %1251 = vadd.xlane.f32.xlu0 %v751_v57  ;;  %v756_v57 = vsel %vm2615_vm14, 1.0, %v3210_v1 }
 0x159   :  { %1249 = vadd.xlane.f32.xlu1 %v750_v17  ;;  %v3358_v17 = vmov 0 }
 0x15a   :  { %v3359_v17 = vsel %vm2624_vm7, 4294967295, %v3358_v17  ;;  %vm3364_vm7 = vnez %v3248_v41  ;;  %v910_v41 = vsub.f32 -1e+30, %v2157_v61 }
 0x15b   :  { %1255 = vadd.xlane.f32.xlu0 %v753_v23  ;;  %3360 = vst [vmem:[#allocation46_spill] sm:$0xff] %v3359_v17  ;;  %v554_v23 = vpop.permute.xlu0 %553 }
 0x15c   :  { %vm580_vm8 = vcmp.eq.s32.totalorder %v554_v23, %v2012_v29 }
 0x15d   :  { %1253 = vadd.xlane.f32.xlu1 %v752_v20  ;;  %v758_v20 = vsel %vm2105_vm1, 1.0, %v3210_v1  ;;  %vm612_vm3 = vmand %vm580_vm8, %vm596_vm2  ;;  %vm514_vm2 = vcmp.eq.s32.totalorder %v2718_v48, %v1997_v25 }
 0x15e   :  { %vm2652_vm1 = vmand %vm613_vm13, %vm3365_vm6  ;;  %vm3232_vm6 = vcmp.eq.s32.totalorder %v2710_v54, %v1997_v25 }
 0x15f   :  { %1259 = vadd.xlane.f32.xlu0 %v755_v19  ;;  %v760_v19 = vsel %vm3364_vm7, 1.0, %v3210_v1  ;;  %v3367_v39 = vsel %vm2652_vm1, 4294967295, %v3366_v39  ;;  %vm2661_vm15 = vmand %vm612_vm3, %vm3369_vm10 }
 0x160   :  { %3368 = vst [vmem:[#allocation47_spill] sm:$0xff] %v3367_v39  ;;  %v762_v58 = vsel %vm2661_vm15, 1.0, %v3210_v1  ;;  %vm599_vm12 = vmxor %vm3232_vm6, %vm3270_vm9  ;;  %vm3377_vm6 = vcmp.lt.s32.totalorder %v1997_v25, 8 }
 0x161   :  { %1257 = vadd.xlane.f32.xlu1 %v754_v24  ;;  %v763_v24 = vsel %vm2652_vm1, 1.0, %v3210_v1  ;;  %vm598_vm13 = vmxor %vm514_vm2, %vm3270_vm9 }
 0x163   :  { %1263 = vadd.xlane.f32.xlu0 %v757_v35  ;;  %v3370_v35 = vmov 0 }
 0x164   :  { %v3371_v35 = vsel %vm2661_vm15, 4294967295, %v3370_v35 }
 0x165   :  { %1261 = vadd.xlane.f32.xlu1 %v756_v57  ;;  %3372 = vst [vmem:[#allocation48_spill] sm:$0xff] %v3371_v35  ;;  %v844_v35 = vsub.f32 %v2196_v18, %v2333_v15  ;;  %v926_v18 = vmul.f32 1.442695, %v910_v41 }
 0x167   :  { %1267 = vadd.xlane.f32.xlu0 %v759_v30  ;;  %v874_v22 = vmul.f32 1.442695, %v844_v35  ;;  %v942_v35 = vmul.f32 1.442695, %v918_v26 }
 0x169   :  { %1265 = vadd.xlane.f32.xlu1 %v758_v20 }
 0x16b   :  { %1271 = vadd.xlane.f32.xlu0 %v761_v33 }
 0x16d   :  { %1269 = vadd.xlane.f32.xlu1 %v760_v19 }
 0x16f   :  { %1275 = vadd.xlane.f32.xlu0 %v763_v24 }
 0x171   :  { %1273 = vadd.xlane.f32.xlu1 %v762_v58  ;;  %v912_v58 = vsub.f32 -1e+30, %v2127_v50 }
 0x173   :  { %v930_v44 = vmul.f32 1.442695, %v912_v58  ;;  %v911_v58 = vsub.f32 -1e+30, %v2210_v37 }
 0x175   :  { %1728 = vpow2.f32 %v930_v44  ;;  %v921_v44 = vsub.f32 -1e+30, %v2187_v11 }
 0x176   :  { %1730 = vpow2.f32 %v946_v27 }
 0x177   :  { %1732 = vpow2.f32 %v874_v22 }
 0x178   :  { %1734 = vpow2.f32 %v926_v18 }
 0x179   :  { %1736 = vpow2.f32 %v876_v5  ;;  %v919_v5 = vsub.f32 -1e+30, %v2194_v16 }
 0x17a   :  { %1738 = vpow2.f32 %v942_v35  ;;  %v924_v35 = vsub.f32 -1e+30, %v2333_v15 }
 0x18f   :  { %v2668_v57 = vpop.xlane.xlu0 %1045 }
 0x190   :  { %3373 = vst [vmem:[#allocation49_spill] sm:$0xff] %v2668_v57  ;;  %v1091_v55 = vsub.f32 %v2127_v50, %v2668_v57 }
 0x191   :  { %v2670_v23 = vpop.xlane.xlu1 %1041 }
 0x192   :  { %v1109_v50 = vmul.f32 1.442695, %v1091_v55  ;;  %v1089_v57 = vsub.f32 %v2157_v61, %v2670_v23  ;;  %v928_v61 = vmul.f32 1.442695, %v911_v58  ;;  %v916_v55 = vsub.f32 -1e+30, %v2230_v6 }
 0x193   :  { %v2672_v30 = vpop.xlane.xlu0 %1061 }
 0x194   :  { %3374 = vst [vmem:[#allocation50_spill] sm:$0xff] %v2672_v30  ;;  %v1099_v34 = vsub.f32 %v2129_v51, %v2672_v30  ;;  %v932_v51 = vmul.f32 1.442695, %v913_v45  ;;  %1740 = vpow2.f32 %v1109_v50  ;;  %v1105_v21 = vmul.f32 1.442695, %v1089_v57 }
 0x195   :  { %v2674_v20 = vpop.xlane.xlu1 %1047  ;;  %v948_v45 = vmul.f32 1.442695, %v921_v44  ;;  %v938_v57 = vmul.f32 1.442695, %v916_v55  ;;  %v3380_v50 = vmov 0.0   ;;  %v1729_v55 = vpop.eup %1728 }
 0x196   :  { %v1125_v30 = vmul.f32 1.442695, %v1099_v34  ;;  %v1092_v18 = vsub.f32 %v2189_v12, %v2674_v20  ;;  %1742 = vpow2.f32 %v932_v51  ;;  %v944_v44 = vmul.f32 1.442695, %v919_v5 }
 0x197   :  { %v2676_v33 = vpop.xlane.xlu0 %1057 }
 0x198   :  { %v1097_v27 = vsub.f32 %v2159_v62, %v2676_v33  ;;  %1744 = vpow2.f32 %v1125_v30  ;;  %v1111_v58 = vmul.f32 1.442695, %v1092_v18  ;;  %v954_v18 = vmul.f32 1.442695, %v924_v35 }
 0x199   :  { %v2678_v19 = vpop.xlane.xlu1 %1063  ;;  %1746 = vpow2.f32 %v928_v61 }
 0x19a   :  { %3375 = vst [vmem:[#allocation51_spill] sm:$0xff] %v2678_v19  ;;  %v1121_v34 = vmul.f32 1.442695, %v1097_v27  ;;  %1748 = vpow2.f32 %v1105_v21  ;;  %v1100_v30 = vsub.f32 %v2187_v11, %v2678_v19  ;;  %v917_v27 = vsub.f32 -1e+30, %v2259_v59 }
 0x19b   :  { %v2680_v24 = vpop.xlane.xlu0 %1043  ;;  %1750 = vpow2.f32 %v948_v45  ;;  %v1731_v45 = vpop.eup %1730  ;;  %v922_v19 = vsub.f32 -1e+30, %v2232_v7 }
 0x19c   :  { %v1090_v22 = vsub.f32 %v2210_v37, %v2680_v24  ;;  %1752 = vpow2.f32 %v1121_v34  ;;  %v1127_v5 = vmul.f32 1.442695, %v1100_v30  ;;  %v925_v34 = vsub.f32 -1e+30, %v2352_v60 }
 0x19d   :  { %v2682_v56 = vpop.xlane.xlu1 %1059  ;;  %1754 = vpow2.f32 %v938_v57  ;;  %v940_v57 = vmul.f32 1.442695, %v917_v27  ;;  %v960_v30 = vmul.f32 0.0, %v1729_v55  ;;  %v923_v55 = vsub.f32 -1e+30, %v2284_v46 }
 0x19e   :  { %3376 = vst [vmem:[#allocation52_spill] sm:$0xff] %v2682_v56  ;;  %v1107_v61 = vmul.f32 1.442695, %v1090_v22  ;;  %1756 = vpow2.f32 %v1111_v58  ;;  %v2773_v22 = vpop.eup %1732 }
 0x19f   :  { %v2684_v9 = vpop.xlane.xlu0 %1053  ;;  %1758 = vpow2.f32 %v944_v44  ;;  %v1735_v35 = vpop.eup %1734 }
 0x1a0   :  { %1760 = vpow2.f32 %v1107_v61  ;;  %v958_v61 = vmul.f32 0.0, %v1735_v35 }
 0x1a1   :  { %v2686_v1 = vpop.xlane.xlu1 %1055  ;;  %1762 = vpow2.f32 %v954_v18 }
 0x1a2   :  { %1764 = vpow2.f32 %v1127_v5 }
 0x1a3   :  { %v2689_v39 = vpop.xlane.xlu0 %1069  ;;  %1766 = vpow2.f32 %v940_v57  ;;  %v950_v57 = vmul.f32 1.442695, %v922_v19 }
 0x1a4   :  { %v1103_v58 = vsub.f32 %v2333_v15, %v2689_v39  ;;  %v956_v15 = vmul.f32 1.442695, %v925_v34 }
 0x1a5   :  { %v2694_v17 = vpop.xlane.xlu1 %1071 }
 0x1a7   :  { %v2702_v53 = vpop.xlane.xlu0 %1049 }
 0x1a9   :  { %v2704_v31 = vpop.xlane.xlu1 %1051 }
 0x1ab   :  { %v2723_v26 = vpop.xlane.xlu0 %1065 }
 0x1ad   :  { %v2715_v41 = vpop.xlane.xlu1 %1067 }
 0x1b1   :  { %v563_v62 = vpop.permute.xlu1 %562 }
 0x1b2   :  { %vm583_vm8 = vcmp.eq.s32.totalorder %v563_v62, %v2012_v29  ;;  %v914_v62 = vsub.f32 -1e+30, %v2253_v36 }
 0x1b3   :  { %vm615_vm3 = vmand %vm583_vm8, %vm599_vm12  ;;  %v560_v12 = vpop.permute.xlu0 %559  ;;  %vm3383_vm8 = vnez %v3331_v28  ;;  %v1096_v28 = vsub.f32 %v2259_v59, %v2686_v1 }
 0x1b4   :  { %vm582_vm10 = vcmp.eq.s32.totalorder %v560_v12, %v2012_v29  ;;  %vm2750_vm1 = vmand %vm615_vm3, %vm3377_vm6  ;;  %v1095_v29 = vsub.f32 %v2230_v6, %v2684_v9  ;;  %v1098_v6 = vsub.f32 %v2194_v16, %v2682_v56  ;;  %v687_v12 = vsel %vm3383_vm8, %v2185_v10, 0.0  ;;  %v2780_v16 = vpop.eup %1736 }
 0x1b5   :  { %vm614_vm9 = vmand %vm582_vm10, %vm598_vm13  ;;  %v765_v51 = vsel %vm2750_vm1, 1.0, %v3380_v50  ;;  %v1739_v56 = vpop.eup %1738  ;;  %vm3384_vm13 = vnez %v3245_v40  ;;  %v3386_v40 = vsel %vm2117_vm0, %v2164_v0, 0.0  ;;  %vm3387_vm3 = vnez %v3276_v14 }
 0x1b6   :  { %1279 = vadd.xlane.f32.xlu0 %v765_v51  ;;  %vm2762_vm12 = vmand %vm614_vm9, %vm3377_vm6  ;;  %v968_v51 = vmul.f32 0.0, %v1731_v45  ;;  %v1123_v10 = vmul.f32 1.442695, %v1098_v6  ;;  %v3385_v44 = vsel %vm3384_vm13, %v2131_v52, 0.0  ;;  %v1741_v27 = vpop.eup %1740  ;;  %v1093_v45 = vsub.f32 %v2253_v36, %v2702_v53 }
 0x1b7   :  { %v764_v21 = vsel %vm2762_vm12, 1.0, %v3380_v50  ;;  %v1117_v50 = vmul.f32 1.442695, %v1095_v29  ;;  %v915_v29 = vsub.f32 -1e+30, %v2286_v4  ;;  %v1743_v18 = vpop.eup %1742  ;;  %v3388_v52 = vsel %vm3387_vm3, 0.0, %v2301_v8 }
 0x1b8   :  { %1277 = vadd.xlane.f32.xlu1 %v764_v21  ;;  %v934_v21 = vmul.f32 1.442695, %v914_v62  ;;  %v1133_v62 = vmul.f32 1.442695, %v1103_v58  ;;  %v976_v59 = vadd.f32 %v960_v30, %v3388_v52  ;;  %v1745_v5 = vpop.eup %1744  ;;  %vm3389_vm10 = vnez %v3282_v13 }
 0x1b9   :  { %1768 = vpow2.f32 %v1117_v50  ;;  %v3390_v6 = vsel %vm3389_vm10, 0.0, %v2319_v3  ;;  %v1747_v36 = vpop.eup %1746  ;;  %v1119_v47 = vmul.f32 1.442695, %v1096_v28  ;;  %v1104_v0 = vsub.f32 %v2352_v60, %v2694_v17 }
 0x1ba   :  { %1203 = vadd.xlane.f32.xlu0 %v687_v12  ;;  %v984_v34 = vadd.f32 %v968_v51, %v3390_v6  ;;  %v966_v12 = vmul.f32 0.0, %v1739_v56  ;;  %1770 = vpow2.f32 %v934_v21  ;;  %vm3391_vm0 = vnez %v3243_v38  ;;  %v1749_v35 = vpop.eup %1748 }
 0x1bb   :  { %1772 = vpow2.f32 %v1123_v10  ;;  %v3392_v14 = vsel %vm3391_vm0, %v2099_v42, 0.0  ;;  %v1139_v8 = vmul.f32 %v1741_v27, %v976_v59  ;;  %vm3393_vm9 = vnez %v3279_v49  ;;  %v1751_v50 = vpop.eup %1750 }
 0x1bc   :  { %1201 = vadd.xlane.f32.xlu1 %v3385_v44  ;;  %v3394_v3 = vsel %vm3393_vm9, 0.0, %v2339_v63  ;;  %v961_v56 = vmul.f32 0.0, %v1743_v18  ;;  %1774 = vpow2.f32 %v956_v15  ;;  %v936_v19 = vmul.f32 1.442695, %v915_v29  ;;  %v1753_v42 = vpop.eup %1752  ;;  %v3399_v15 = vld [vmem:[#allocation26_spill] sm:$0xff] }
 0x1bd   :  { %v974_v13 = vadd.f32 %v958_v61, %v3394_v3  ;;  %1776 = vpow2.f32 %v1133_v62  ;;  %v1113_v58 = vmul.f32 1.442695, %v1093_v45  ;;  %v1101_v60 = vsub.f32 %v2232_v7, %v2723_v26  ;;  %v1755_v63 = vpop.eup %1754  ;;  %v3397_v7 = vld [vmem:[#allocation23_spill] sm:$0xff] }
 0x1be   :  { %1207 = vadd.xlane.f32.xlu0 %v3386_v40  ;;  %v1147_v38 = vmul.f32 %v1745_v5, %v984_v34  ;;  %vm3395_vm6 = vnez %v3285_v32  ;;  %v959_v51 = vmul.f32 0.0, %v1747_v36  ;;  %1778 = vpow2.f32 %v950_v57  ;;  %v1757_v44 = vpop.eup %1756  ;;  %v3401_v40 = vld [vmem:[#allocation27_spill] sm:$0xff] }
 0x1bf   :  { %v3396_v30 = vsel %vm3395_vm6, 0.0, %v2341_v43  ;;  %1780 = vpow2.f32 %v1119_v47  ;;  %v1135_v21 = vmul.f32 1.442695, %v1104_v0  ;;  %v1094_v10 = vsub.f32 %v2286_v4, %v2704_v31  ;;  %v1759_v43 = vpop.eup %1758  ;;  %v3403_v4 = vld [vmem:[#allocation29_spill] sm:$0xff] }
 0x1c0   :  { %1205 = vadd.xlane.f32.xlu1 %v3392_v14  ;;  %v982_v49 = vadd.f32 %v966_v12, %v3396_v30  ;;  %v1137_v28 = vmul.f32 %v1749_v35, %v974_v13  ;;  %vm3398_vm8 = vnez %v3397_v7  ;;  %1782 = vpow2.f32 %v936_v19  ;;  %v1761_v45 = vpop.eup %1760  ;;  %v3405_v47 = vld [vmem:[#allocation21_spill] sm:$0xff]  ;;  %v3413_v19 = vld [vmem:[#allocation30_spill] sm:$0xff] }
 0x1c1   :  { %v3400_v27 = vsel %vm3398_vm8, 0.0, %v3399_v15  ;;  %v952_v32 = vmul.f32 1.442695, %v923_v55  ;;  %1784 = vpow2.f32 %v1113_v58  ;;  %v1129_v29 = vmul.f32 1.442695, %v1101_v60  ;;  %v1763_v6 = vpop.eup %1762 }
 0x1c2   :  { %1157 = vadd.xlane.f32.xlu0 %v1139_v8  ;;  %v977_v61 = vadd.f32 %v961_v56, %v3400_v27  ;;  %v1145_v18 = vmul.f32 %v1753_v42, %v982_v49  ;;  %v969_v62 = vmul.f32 0.0, %v1751_v50  ;;  %vm3402_vm13 = vnez %v3401_v40  ;;  %v1765_v57 = vpop.eup %1764  ;;  %v3409_v8 = vld [vmem:[#allocation22_spill] sm:$0xff]  ;;  %v3415_v50 = vld [vmem:[#allocation32_spill] sm:$0xff] }
 0x1c3   :  { %v3404_v52 = vsel %vm3402_vm13, 0.0, %v3403_v4  ;;  %v964_v5 = vmul.f32 0.0, %v1755_v63  ;;  %1786 = vpow2.f32 %v1135_v21  ;;  %v1115_v34 = vmul.f32 1.442695, %v1094_v10  ;;  %v1767_v36 = vpop.eup %1766  ;;  %v3417_v10 = vld [vmem:[#allocation25_spill] sm:$0xff]  ;;  %v3424_v40 = vld [vmem:[#allocation36_spill] sm:$0xff] }
 0x1c4   :  { %1173 = vadd.xlane.f32.xlu1 %v1147_v38  ;;  %v975_v59 = vadd.f32 %v959_v51, %v3404_v52  ;;  %v1102_v12 = vsub.f32 %v2284_v46, %v2715_v41  ;;  %v1140_v55 = vmul.f32 %v1757_v44, %v977_v61  ;;  %1788 = vpow2.f32 %v952_v32  ;;  %v3411_v46 = vld [vmem:[#allocation24_spill] sm:$0xff]  ;;  %v3426_v4 = vld [vmem:[#allocation38_spill] sm:$0xff] }
 0x1c5   :  { %1790 = vpow2.f32 %v1129_v29  ;;  %vm3406_vm3 = vnez %v3405_v47  ;;  %vm3410_vm0 = vnez %v3409_v8  ;;  %v967_v13 = vmul.f32 0.0, %v1759_v43 }
 0x1c6   :  { %1153 = vadd.xlane.f32.xlu0 %v1137_v28  ;;  %vm2838_vm10 = vmor %vm514_vm2, %vm3406_vm3  ;;  %v1138_v14 = vmul.f32 %v1761_v45, %v975_v59  ;;  %v3412_v35 = vsel %vm3410_vm0, 0.0, %v3411_v46  ;;  %v1769_v56 = vpop.eup %1768  ;;  %vm3414_vm9 = vnez %v3413_v19  ;;  %1792 = vpow2.f32 %v1115_v34  ;;  %v3419_v28 = vld [vmem:[#allocation28_spill] sm:$0xff]  ;;  %v3428_v34 = vld [vmem:[#allocation34_spill] sm:$0xff] }
 0x1c7   :  { %v985_v3 = vadd.f32 %v969_v62, %v3412_v35  ;;  %v3416_v58 = vsel %vm3414_vm9, 0.0, %v3415_v50  ;;  %v1771_v38 = vpop.eup %1770  ;;  %v1131_v48 = vmul.f32 1.442695, %v1102_v12  ;;  %v972_v30 = vmul.f32 0.0, %v1763_v6  ;;  %v3430_v12 = vld [vmem:[#allocation35_spill] sm:$0xff] }
 0x1c8   :  { %1169 = vadd.xlane.f32.xlu1 %v1145_v18  ;;  %v980_v60 = vadd.f32 %v964_v5, %v3416_v58  ;;  %v1773_v49 = vpop.eup %1772  ;;  %v892_v51 = vsel %vm2838_vm10, 0.0, %v2773_v22  ;;  %vm3418_vm2 = vnez %v3417_v10  ;;  %v965_v15 = vmul.f32 0.0, %v1767_v36 }
 0x1c9   :  { %v1148_v42 = vmul.f32 %v1765_v57, %v985_v3  ;;  %v1775_v63 = vpop.eup %1774  ;;  %v3420_v44 = vsel %vm3418_vm2, 0.0, %v3419_v28  ;;  %1794 = vpow2.f32 %v1131_v48  ;;  %vm3421_vm6 = vcmp.eq.s32.totalorder %v2710_v54, %v1997_v25 }
 0x1ca   :  { %1159 = vadd.xlane.f32.xlu0 %v1140_v55  ;;  %v1143_v21 = vmul.f32 %v1769_v56, %v980_v60  ;;  %v983_v7 = vadd.f32 %v967_v13, %v3420_v44  ;;  %v1777_v27 = vpop.eup %1776  ;;  %vm2862_vm8 = vmor %vm3421_vm6, %vm3406_vm3  ;;  %v988_v43 = vadd.f32 %v972_v30, %v892_v51  ;;  %v962_v29 = vmul.f32 0.0, %v1771_v38  ;;  %v3432_v13 = vld [vmem:[#allocation31_spill] sm:$0xff]  ;;  %v3438_v38 = vld [vmem:[#allocation41_spill] sm:$0xff] }
 0x1cb   :  { %v1779_v61 = vpop.eup %1778  ;;  %vm3425_vm13 = vnez %v3424_v40  ;;  %v973_v5 = vmul.f32 0.0, %v1775_v63  ;;  %v893_v25 = vsel %vm2862_vm8, 0.0, %v2780_v16  ;;  %vm3429_vm3 = vnez %v3428_v34  ;;  %v3434_v16 = vld [vmem:[#allocation33_spill] sm:$0xff]  ;;  %v3436_v60 = vld [vmem:[#allocation39_spill] sm:$0xff]  ;;  %v3461_v34 = vld [vmem:[#allocation46_spill] sm:$0xff] }
 0x1cc   :  { %1155 = vadd.xlane.f32.xlu1 %v1138_v14  ;;  %v1146_v22 = vmul.f32 %v1773_v49, %v983_v7  ;;  %v1781_v18 = vpop.eup %1780  ;;  %v1151_v45 = vmul.f32 %v1777_v27, %v988_v43  ;;  %v3427_v52 = vsel %vm3425_vm13, 0.0, %v3426_v4  ;;  %v3431_v55 = vsel %vm3429_vm3, 0.0, %v3430_v12  ;;  %v3440_v63 = vld [vmem:[#allocation37_spill] sm:$0xff]  ;;  %v3448_v43 = vld [vmem:[#allocation20_spill] sm:$0xff]  ;;  %v3454_v4 = vld [vmem:[#allocation18_spill] sm:$0xff] }
 0x1cd   :  { %v1783_v62 = vpop.eup %1782  ;;  %v981_v59 = vadd.f32 %v965_v15, %v3427_v52  ;;  %v978_v57 = vadd.f32 %v962_v29, %v3431_v55  ;;  %v970_v36 = vmul.f32 0.0, %v1779_v61  ;;  %v989_v8 = vadd.f32 %v973_v5, %v893_v25  ;;  %v3444_v44 = vld [vmem:[#allocation17_spill] sm:$0xff]  ;;  %v3446_v61 = vld [vmem:[#allocation15_spill] sm:$0xff]  ;;  %v3455_v52 = vld [vmem:[#allocation44_spill] sm:$0xff] }
 0x1ce   :  { %1175 = vadd.xlane.f32.xlu0 %v1148_v42  ;;  %v1785_v6 = vpop.eup %1784  ;;  %v963_v46 = vmul.f32 0.0, %v1783_v62  ;;  %vm3433_vm10 = vnez %v3432_v13  ;;  %vm3437_vm0 = vnez %v3436_v60  ;;  %vm3441_vm9 = vnez %v3440_v63  ;;  %v3450_v62 = vld [vmem:[#allocation9_spill] sm:$0xff]  ;;  %v3463_v55 = vld [vmem:[#allocation16_spill] sm:$0xff] }
 0x1cf   :  { %v1144_v54 = vmul.f32 %v1781_v18, %v981_v59  ;;  %v1141_v14 = vmul.f32 %v1785_v6, %v978_v57  ;;  %v3435_v56 = vsel %vm3433_vm10, 0.0, %v3434_v16  ;;  %v3439_v48 = vsel %vm3437_vm0, 0.0, %v3438_v38  ;;  %v3458_v6 = vld [vmem:[#allocation8_spill] sm:$0xff] }
 0x1d0   :  { %1165 = vadd.xlane.f32.xlu1 %v1143_v21  ;;  %v1787_v47 = vpop.eup %1786  ;;  %v986_v19 = vadd.f32 %v970_v36, %v3435_v56  ;;  %v979_v42 = vadd.f32 %v963_v46, %v3439_v48  ;;  %v3442_v21 = vld [vmem:[#allocation40_spill] sm:$0xff]  ;;  %v690_v15 = vsel %vm2593_vm5, %v3444_v44, 0.0  ;;  %v691_v18 = vsel %vm2582_vm11, %v3448_v43, 0.0 }
 0x1d1   :  { %v1789_v0 = vpop.eup %1788  ;;  %v1152_v3 = vmul.f32 %v1787_v47, %v989_v8  ;;  %v3443_v10 = vsel %vm3441_vm9, 0.0, %v3442_v21  ;;  %vm3451_vm2 = vnez %v3450_v62  ;;  %vm3456_vm5 = vnez %v3455_v52  ;;  %v3468_v8 = vld [vmem:[#allocation14_spill] sm:$0xff] }
 0x1d2   :  { %1171 = vadd.xlane.f32.xlu0 %v1146_v22  ;;  %v1791_v35 = vpop.eup %1790  ;;  %v971_v30 = vmul.f32 0.0, %v1789_v0  ;;  %v692_v22 = vsel %vm2615_vm14, %v3446_v61, 0.0  ;;  %v693_v59 = vsel %vm3456_vm5, %v3454_v4, 0.0  ;;  %v3459_v25 = vsel %vm3364_vm7, %v3458_v6, 0.0  ;;  %v3466_v0 = vld [vmem:[#allocation12_spill] sm:$0xff] }
 0x1d3   :  { %v1793_v50 = vpop.eup %1792  ;;  %v1149_v58 = vmul.f32 %v1791_v35, %v986_v19  ;;  %vm3462_vm14 = vnez %v3461_v34  ;;  %v698_v36 = vsel %vm2661_vm15, %v3463_v55, 0.0  ;;  %v700_v46 = vsel %vm2762_vm12, %v3468_v8, 0.0  ;;  %v3469_v35 = vld [vmem:[#allocation19_spill] sm:$0xff] }
 0x1d4   :  { %1181 = vadd.xlane.f32.xlu1 %v1151_v45  ;;  %v1142_v49 = vmul.f32 %v1793_v50, %v979_v42  ;;  %v987_v28 = vadd.f32 %v971_v30, %v3443_v10  ;;  %v3452_v45 = vld [vmem:[#allocation10_spill] sm:$0xff]  ;;  %v701_v16 = vsel %vm2750_vm1, %v2225_v2, 0.0  ;;  %vm1457_vm9 = vcmask 7168  }
 0x1d5   :  { %v3453_v40 = vsel %vm3451_vm2, %v3452_v45, 0.0 }
 0x1d6   :  { %1167 = vadd.xlane.f32.xlu0 %v1144_v54  ;;  %v1795_v51 = vpop.eup %1794  ;;  %v3460_v54 = vld [vmem:[#allocation13_spill] sm:$0xff] }
 0x1d7   :  { %v1150_v27 = vmul.f32 %v1795_v51, %v987_v28  ;;  %v695_v12 = vsel %vm3462_vm14, %v3460_v54, 0.0 }
 0x1d8   :  { %1161 = vadd.xlane.f32.xlu1 %v1141_v14  ;;  %v3467_v14 = vsel %vm3363_vm4, %v3466_v0, 0.0 }
 0x1da   :  { %1183 = vadd.xlane.f32.xlu0 %v1152_v3  ;;  %v3470_v3 = vld [vmem:[#allocation47_spill] sm:$0xff] }
 0x1db   :  { %vm3471_vm11 = vnez %v3470_v3 }
 0x1dc   :  { %1177 = vadd.xlane.f32.xlu1 %v1149_v58  ;;  %v699_v13 = vsel %vm3471_vm11, %v3469_v35, 0.0 }
 0x1de   :  { %1163 = vadd.xlane.f32.xlu0 %v1142_v49 }
 0x1e0   :  { %1209 = vadd.xlane.f32.xlu1 %v690_v15  ;;  %v2928_v56 = vpop.xlane.xlu0 %1251 }
 0x1e1   :  { %vm1378_vm1 = vcmp.lt.f32.partialorder %v2928_v56, 1e-06 }
 0x1e2   :  { %1179 = vadd.xlane.f32.xlu0 %v1150_v27  ;;  %v2930_v19 = vpop.xlane.xlu1 %1249  ;;  %v1394_v61 = vsel %vm1378_vm1, 1.0, %v2928_v56 }
 0x1e3   :  { %vm1377_vm7 = vcmp.lt.f32.partialorder %v2930_v19, 1e-06 }
 0x1e4   :  { %1213 = vadd.xlane.f32.xlu1 %v692_v22  ;;  %v2932_v50 = vpop.xlane.xlu0 %1255  ;;  %v1393_v22 = vsel %vm1377_vm7, 1.0, %v2930_v19 }
 0x1e5   :  { %vm1380_vm4 = vcmp.lt.f32.partialorder %v2932_v50, 1e-06 }
 0x1e6   :  { %1211 = vadd.xlane.f32.xlu0 %v691_v18  ;;  %v2934_v58 = vpop.xlane.xlu1 %1253  ;;  %v1396_v29 = vsel %vm1380_vm4, 1.0, %v2932_v50 }
 0x1e7   :  { %vm1379_vm15 = vcmp.lt.f32.partialorder %v2934_v58, 1e-06 }
 0x1e8   :  { %1217 = vadd.xlane.f32.xlu1 %v3453_v40  ;;  %v2936_v11 = vpop.xlane.xlu0 %1259  ;;  %v1395_v62 = vsel %vm1379_vm15, 1.0, %v2934_v58 }
 0x1e9   :  { %vm1382_vm12 = vcmp.lt.f32.partialorder %v2936_v11, 1e-06 }
 0x1ea   :  { %1215 = vadd.xlane.f32.xlu0 %v693_v59  ;;  %v2938_v60 = vpop.xlane.xlu1 %1257  ;;  %v1398_v40 = vsel %vm1382_vm12, 1.0, %v2936_v11 }
 0x1eb   :  { %vm1381_vm6 = vcmp.lt.f32.partialorder %v2938_v60, 1e-06 }
 0x1ec   :  { %1221 = vadd.xlane.f32.xlu1 %v3459_v25  ;;  %v2940_v38 = vpop.xlane.xlu0 %1263  ;;  %v1397_v6 = vsel %vm1381_vm6, 1.0, %v2938_v60 }
 0x1ed   :  { %vm1384_vm8 = vcmp.lt.f32.partialorder %v2940_v38, 1e-06 }
 0x1ee   :  { %1219 = vadd.xlane.f32.xlu0 %v695_v12  ;;  %v2942_v48 = vpop.xlane.xlu1 %1261  ;;  %v1400_v54 = vsel %vm1384_vm8, 1.0, %v2940_v38 }
 0x1ef   :  { %vm1383_vm13 = vcmp.lt.f32.partialorder %v2942_v48, 1e-06 }
 0x1f0   :  { %1225 = vadd.xlane.f32.xlu1 %v698_v36  ;;  %v2944_v42 = vpop.xlane.xlu0 %1267  ;;  %v1399_v57 = vsel %vm1383_vm13, 1.0, %v2942_v48 }
 0x1f1   :  { %vm1386_vm0 = vcmp.lt.f32.partialorder %v2944_v42, 1e-06 }
 0x1f2   :  { %1223 = vadd.xlane.f32.xlu0 %v3467_v14  ;;  %v2946_v2 = vpop.xlane.xlu1 %1265 }
 0x1f3   :  { %vm1385_vm3 = vcmp.lt.f32.partialorder %v2946_v2, 1e-06 }
 0x1f4   :  { %1229 = vadd.xlane.f32.xlu1 %v700_v46  ;;  %v2948_v37 = vpop.xlane.xlu0 %1271  ;;  %v1401_v14 = vsel %vm1385_vm3, 1.0, %v2946_v2 }
 0x1f5   :  { %vm1388_vm2 = vcmp.lt.f32.partialorder %v2948_v37, 1e-06 }
 0x1f6   :  { %1227 = vadd.xlane.f32.xlu0 %v699_v13  ;;  %v2950_v30 = vpop.xlane.xlu1 %1269 }
 0x1f7   :  { %vm1387_vm10 = vcmp.lt.f32.partialorder %v2950_v30, 1e-06 }
 0x1f8   :  { %v2952_v49 = vpop.xlane.xlu0 %1275 }
 0x1f9   :  { %vm1390_vm11 = vcmp.lt.f32.partialorder %v2952_v49, 1e-06 }
 0x1fa   :  { %1231 = vadd.xlane.f32.xlu0 %v701_v16  ;;  %v2954_v51 = vpop.xlane.xlu1 %1273 }
 0x1fb   :  { %vm1389_vm5 = vcmp.lt.f32.partialorder %v2954_v51, 1e-06 }
 0x23f   :  { %v2956_v63 = vpop.xlane.xlu0 %1279 }
 0x240   :  { %vm1392_vm1 = vcmp.lt.f32.partialorder %v2956_v63, 1e-06 }
 0x241   :  { %v2958_v21 = vpop.xlane.xlu1 %1277 }
 0x242   :  { %vm1391_vm14 = vcmp.lt.f32.partialorder %v2958_v21, 1e-06 }
 0x243   :  { %v2960_v10 = vpop.xlane.xlu0 %1203 }
 0x245   :  { %v2962_v28 = vpop.xlane.xlu1 %1201 }
 0x247   :  { %v2964_v44 = vpop.xlane.xlu0 %1207 }
 0x249   :  { %v2966_v7 = vpop.xlane.xlu1 %1205 }
 0x24b   :  { %v1158_v15 = vpop.xlane.xlu0 %1157 }
 0x24c   :  { %v1283_v27 = vadd.f32 1e-06, %v1158_v15  ;;  %v3472_v15 = vld [vmem:[#allocation49_spill] sm:$0xff] }
 0x24d   :  { %v1174_v32 = vpop.xlane.xlu1 %1173 }
 0x24e   :  { %1796 = vlog2.f32 %v1283_v27  ;;  %v1291_v34 = vadd.f32 1e-06, %v1174_v32 }
 0x24f   :  { %v1154_v43 = vpop.xlane.xlu0 %1153  ;;  %1798 = vrcp.f32 %v1394_v61 }
 0x250   :  { %v1281_v18 = vadd.f32 1e-06, %v1154_v43  ;;  %1800 = vrcp.f32 %v1393_v22 }
 0x251   :  { %v1170_v45 = vpop.xlane.xlu1 %1169 }
 0x252   :  { %1802 = vlog2.f32 %v1281_v18  ;;  %v1289_v4 = vadd.f32 1e-06, %v1170_v45 }
 0x253   :  { %1804 = vrcp.f32 %v1396_v29  ;;  %v1160_v52 = vpop.xlane.xlu0 %1159 }
 0x254   :  { %1806 = vrcp.f32 %v1395_v62  ;;  %v1284_v59 = vadd.f32 1e-06, %v1160_v52 }
 0x255   :  { %1808 = vrcp.f32 %v1398_v40  ;;  %v1156_v5 = vpop.xlane.xlu1 %1155 }
 0x256   :  { %1810 = vlog2.f32 %v1284_v59  ;;  %v1282_v25 = vadd.f32 1e-06, %v1156_v5 }
 0x257   :  { %1812 = vlog2.f32 %v1289_v4  ;;  %v1176_v12 = vpop.xlane.xlu0 %1175 }
 0x258   :  { %1814 = vlog2.f32 %v1282_v25  ;;  %v1292_v3 = vadd.f32 1e-06, %v1176_v12 }
 0x259   :  { %1816 = vrcp.f32 %v1397_v6  ;;  %v1166_v55 = vpop.xlane.xlu1 %1165  ;;  %v1403_v6 = vsel %vm1387_vm10, 1.0, %v2950_v30 }
 0x25a   :  { %1818 = vrcp.f32 %v1400_v54  ;;  %v1287_v36 = vadd.f32 1e-06, %v1166_v55 }
 0x25b   :  { %v1797_v47 = vpop.eup %1796  ;;  %1820 = vlog2.f32 %v1291_v34  ;;  %v1172_v0 = vpop.xlane.xlu0 %1171 }
 0x25c   :  { %v1302_v8 = vmul.f32 0.6931472, %v1797_v47  ;;  %1822 = vlog2.f32 %v1287_v36  ;;  %v1290_v46 = vadd.f32 1e-06, %v1172_v0  ;;  %v2986_v35 = vpop.eup %1798 }
 0x25d   :  { %1824 = vrcp.f32 %v1399_v57  ;;  %v1182_v13 = vpop.xlane.xlu1 %1181  ;;  %v1801_v16 = vpop.eup %1800 }
 0x25e   :  { %v1331_v27 = vadd.f32 %v1302_v8, %v3472_v15  ;;  %1826 = vlog2.f32 %v1290_v46  ;;  %v1295_v32 = vadd.f32 1e-06, %v1182_v13 }
 0x25f   :  { %v1803_v61 = vpop.eup %1802  ;;  %1828 = vrcp.f32 %v1401_v14  ;;  %v1168_v22 = vpop.xlane.xlu0 %1167 }
 0x260   :  { %v2989_v43 = vpop.eup %1804  ;;  %v1347_v29 = vmul.f32 %v1331_v27, %v2934_v58  ;;  %v1298_v18 = vmul.f32 0.6931472, %v1803_v61  ;;  %v1288_v62 = vadd.f32 1e-06, %v1168_v22  ;;  %1830 = vlog2.f32 %v1292_v3 }
 0x261   :  { %v1807_v45 = vpop.eup %1806  ;;  %v1162_v40 = vpop.xlane.xlu1 %1161 }
 0x262   :  { %v2993_v4 = vpop.eup %1808  ;;  %v1363_v52 = vsub.f32 %v2966_v7, %v1347_v29  ;;  %v1329_v59 = vadd.f32 %v1298_v18, %v2670_v23  ;;  %1832 = vlog2.f32 %v1288_v62  ;;  %v1285_v25 = vadd.f32 1e-06, %v1162_v40 }
 0x263   :  { %v1811_v5 = vpop.eup %1810  ;;  %1834 = vlog2.f32 %v1295_v32  ;;  %v1184_v54 = vpop.xlane.xlu0 %1183  ;;  %v1402_v32 = vsel %vm1386_vm0, 1.0, %v2944_v42 }
 0x264   :  { %v1813_v34 = vpop.eup %1812  ;;  %v1411_v58 = vmul.f32 -1.0, %v1363_v52  ;;  %v1345_v12 = vmul.f32 %v1329_v59, %v2930_v19  ;;  %v1304_v55 = vmul.f32 0.6931472, %v1811_v5  ;;  %v1296_v57 = vadd.f32 1e-06, %v1184_v54 }
 0x265   :  { %v1815_v36 = vpop.eup %1814  ;;  %1836 = vlog2.f32 %v1285_v25  ;;  %v1178_v7 = vpop.xlane.xlu1 %1177  ;;  %v1314_v19 = vmul.f32 0.6931472, %v1813_v34  ;;  %v1404_v25 = vsel %vm1388_vm2, 1.0, %v2948_v37 }
 0x266   :  { %v3000_v23 = vpop.eup %1816  ;;  %v1443_v47 = vmul.f32 %v1807_v45, %v1411_v58  ;;  %v1361_v0 = vsub.f32 %v2962_v28, %v1345_v12  ;;  %v1332_v14 = vadd.f32 %v1304_v55, %v2674_v20  ;;  %v1300_v8 = vmul.f32 0.6931472, %v1815_v36 }
 0x267   :  { %v3004_v46 = vpop.eup %1818  ;;  %1838 = vrcp.f32 %v1403_v6  ;;  %v1293_v3 = vadd.f32 1e-06, %v1178_v7  ;;  %v1164_v13 = vpop.xlane.xlu0 %1163  ;;  %v1407_v36 = vsel %vm1391_vm14, 1.0, %v2958_v21 }
 0x268   :  { %v1821_v15 = vpop.eup %1820  ;;  %1460 = vst.msk [vmem:[%s3140_s4 + $0x10] sm:$0xff] %vm1457_vm9, %v1443_v47  ;;  %v1409_v27 = vmul.f32 -1.0, %v1361_v0  ;;  %v1348_v61 = vmul.f32 %v1332_v14, %v2932_v50  ;;  %v1330_v28 = vadd.f32 %v1300_v8, %v2680_v24  ;;  %1840 = vlog2.f32 %v1296_v57  ;;  %v3473_v8 = vld [vmem:[#allocation50_spill] sm:$0xff] }
 0x269   :  { %v1823_v20 = vpop.eup %1822  ;;  %1842 = vlog2.f32 %v1293_v3  ;;  %v1286_v22 = vadd.f32 1e-06, %v1164_v13  ;;  %v3016_v29 = vpop.xlane.xlu1 %1209  ;;  %v1318_v52 = vmul.f32 0.6931472, %v1821_v15 }
 0x26a   :  { %v3018_v18 = vpop.eup %1824  ;;  %v1441_v62 = vmul.f32 %v1801_v16, %v1409_v27  ;;  %v1364_v45 = vsub.f32 %v2964_v44, %v1348_v61  ;;  %v1346_v50 = vmul.f32 %v1330_v28, %v2928_v56  ;;  %v1310_v24 = vmul.f32 0.6931472, %v1823_v20  ;;  %v3474_v61 = vld [vmem:[#allocation52_spill] sm:$0xff] }
 0x26b   :  { %v1827_v40 = vpop.eup %1826  ;;  %1844 = vlog2.f32 %v1286_v22  ;;  %v1180_v59 = vpop.xlane.xlu0 %1179  ;;  %v1337_v56 = vadd.f32 %v1314_v19, %v2676_v33  ;;  %v1405_v33 = vsel %vm1389_vm5, 1.0, %v2954_v51  ;;  %v1339_v19 = vadd.f32 %v1318_v52, %v3473_v8 }
 0x26c   :  { %v1829_v5 = vpop.eup %1828  ;;  %1458 = vst.msk [vmem:[%s3140_s4] sm:$0xff] %vm1457_vm9, %v1441_v62  ;;  %v1412_v16 = vmul.f32 -1.0, %v1364_v45  ;;  %v1362_v44 = vsub.f32 %v2960_v10, %v1346_v50  ;;  %v1294_v6 = vadd.f32 1e-06, %v1180_v59  ;;  %1846 = vrcp.f32 %v1402_v32 }
 0x26d   :  { %v1335_v54 = vadd.f32 %v1310_v24, %v2684_v9  ;;  %v1214_v34 = vpop.xlane.xlu1 %1213  ;;  %v1831_v58 = vpop.eup %1830  ;;  %v1316_v57 = vmul.f32 0.6931472, %v1827_v40  ;;  %v1353_v14 = vmul.f32 %v1337_v56, %v2946_v2  ;;  %v1408_v20 = vsel %vm1392_vm1, 1.0, %v2956_v63 }
 0x26e   :  { %v1444_v12 = vmul.f32 %v2989_v43, %v1412_v16  ;;  %v1410_v55 = vmul.f32 -1.0, %v1362_v44  ;;  %1848 = vlog2.f32 %v1294_v6  ;;  %v1320_v3 = vmul.f32 0.6931472, %v1831_v58  ;;  %v3475_v6 = vld [vmem:[#allocation51_spill] sm:$0xff] }
 0x26f   :  { %v1833_v10 = vpop.eup %1832  ;;  %v1351_v9 = vmul.f32 %v1335_v54, %v2942_v48  ;;  %v3044_v7 = vpop.xlane.xlu0 %1211  ;;  %1850 = vrcp.f32 %v1404_v25  ;;  %v1406_v48 = vsel %vm1390_vm11, 1.0, %v2952_v49  ;;  %v1338_v28 = vadd.f32 %v1316_v57, %v3474_v61 }
 0x270   :  { %v1835_v47 = vpop.eup %1834  ;;  %1461 = vst.msk [vmem:[%s3140_s4 + $0x18] sm:$0xff] %vm1457_vm9, %v1444_v12  ;;  %v1442_v43 = vmul.f32 %v2986_v35, %v1410_v55  ;;  %v1312_v0 = vmul.f32 0.6931472, %v1833_v10  ;;  %1852 = vrcp.f32 %v1405_v33  ;;  %v1355_v52 = vmul.f32 %v1339_v19, %v2950_v30 }
 0x271   :  { %v1367_v13 = vsub.f32 %v1214_v34, %v1351_v9  ;;  %v1218_v15 = vpop.xlane.xlu1 %1217  ;;  %1854 = vrcp.f32 %v1407_v36  ;;  %v1326_v50 = vmul.f32 0.6931472, %v1835_v47  ;;  %v1340_v56 = vadd.f32 %v1320_v3, %v3475_v6 }
 0x272   :  { %v1837_v27 = vpop.eup %1836  ;;  %1459 = vst.msk [vmem:[%s3140_s4 + $0x8] sm:$0xff] %vm1457_vm9, %v1442_v43  ;;  %v1369_v35 = vsub.f32 %v1218_v15, %v1353_v14  ;;  %v1336_v2 = vadd.f32 %v1312_v0, %v2686_v1  ;;  %1856 = vrcp.f32 %v1406_v48  ;;  %v1354_v12 = vmul.f32 %v1338_v28, %v2944_v42 }
 0x273   :  { %v1306_v32 = vmul.f32 0.6931472, %v1837_v27  ;;  %v1415_v22 = vmul.f32 -1.0, %v1367_v13  ;;  %v1216_v62 = vpop.xlane.xlu0 %1215  ;;  %1858 = vrcp.f32 %v1408_v20  ;;  %v1343_v42 = vadd.f32 %v1326_v50, %v2689_v39 }
 0x274   :  { %v1839_v45 = vpop.eup %1838  ;;  %v1417_v24 = vmul.f32 -1.0, %v1369_v35  ;;  %v1352_v40 = vmul.f32 %v1336_v2, %v2940_v38  ;;  %v1356_v9 = vmul.f32 %v1340_v56, %v2948_v37 }
 0x275   :  { %v1841_v59 = vpop.eup %1840  ;;  %v1333_v1 = vadd.f32 %v1306_v32, %v2702_v53  ;;  %v1447_v16 = vmul.f32 %v3018_v18, %v1415_v22  ;;  %v1222_v44 = vpop.xlane.xlu1 %1221 }
 0x276   :  { %v1843_v25 = vpop.eup %1842  ;;  %v1449_v54 = vmul.f32 %v1829_v5, %v1417_v24  ;;  %v1368_v34 = vsub.f32 %v1216_v62, %v1352_v40  ;;  %v1371_v58 = vsub.f32 %v1222_v44, %v1355_v52  ;;  %v1328_v43 = vmul.f32 0.6931472, %v1841_v59 }
 0x277   :  { %v1322_v55 = vmul.f32 0.6931472, %v1843_v25  ;;  %v1349_v38 = vmul.f32 %v1333_v1, %v2938_v60  ;;  %1464 = vst.msk [vmem:[%s3140_s4 + $0x30] sm:$0xff] %vm1457_vm9, %v1447_v16  ;;  %v1220_v53 = vpop.xlane.xlu0 %1219 }
 0x278   :  { %v1845_v30 = vpop.eup %1844  ;;  %1466 = vst.msk [vmem:[%s3140_s4 + $0x40] sm:$0xff] %vm1457_vm9, %v1449_v54  ;;  %v1416_v18 = vmul.f32 -1.0, %v1368_v34  ;;  %v1419_v5 = vmul.f32 -1.0, %v1371_v58  ;;  %v1370_v57 = vsub.f32 %v1220_v53, %v1354_v12  ;;  %v1344_v20 = vadd.f32 %v1328_v43, %v2694_v17 }
 0x279   :  { %v1308_v10 = vmul.f32 0.6931472, %v1845_v30  ;;  %v1365_v60 = vsub.f32 %v3016_v29, %v1349_v38  ;;  %v1341_v33 = vadd.f32 %v1322_v55, %v2723_v26  ;;  %v1226_v36 = vpop.xlane.xlu1 %1225  ;;  %v1847_v47 = vpop.eup %1846 }
 0x27a   :  { %v1448_v0 = vmul.f32 %v3004_v46, %v1416_v18  ;;  %v1451_v14 = vmul.f32 %v1839_v45, %v1419_v5  ;;  %v1418_v8 = vmul.f32 -1.0, %v1370_v57  ;;  %v1359_v46 = vmul.f32 %v1343_v42, %v2958_v21 }
 0x27b   :  { %v1849_v19 = vpop.eup %1848  ;;  %v1413_v48 = vmul.f32 -1.0, %v1365_v60  ;;  %v1334_v3 = vadd.f32 %v1308_v10, %v2704_v31  ;;  %v1357_v39 = vmul.f32 %v1341_v33, %v2954_v51  ;;  %v1224_v13 = vpop.xlane.xlu0 %1223  ;;  %v1360_v59 = vmul.f32 %v1344_v20, %v2956_v63 }
 0x27c   :  { %v1324_v15 = vmul.f32 0.6931472, %v1849_v19  ;;  %1465 = vst.msk [vmem:[%s3140_s4 + $0x38] sm:$0xff] %vm1457_vm9, %v1448_v0  ;;  %1468 = vst.msk [vmem:[%s3140_s4 + $0x50] sm:$0xff] %vm1457_vm9, %v1451_v14  ;;  %v1450_v26 = vmul.f32 %v1847_v47, %v1418_v8  ;;  %v1372_v37 = vsub.f32 %v1224_v13, %v1356_v9  ;;  %v1851_v35 = vpop.eup %1850 }
 0x27d   :  { %v1445_v31 = vmul.f32 %v3000_v23, %v1413_v48  ;;  %v1350_v51 = vmul.f32 %v1334_v3, %v2936_v11  ;;  %v1373_v29 = vsub.f32 %v1226_v36, %v1357_v39  ;;  %v1230_v27 = vpop.xlane.xlu1 %1229  ;;  %v1853_v32 = vpop.eup %1852 }
 0x27e   :  { %1467 = vst.msk [vmem:[%s3140_s4 + $0x48] sm:$0xff] %vm1457_vm9, %v1450_v26  ;;  %v1420_v2 = vmul.f32 -1.0, %v1372_v37  ;;  %v1375_v61 = vsub.f32 %v1230_v27, %v1359_v46  ;;  %v1342_v28 = vadd.f32 %v1324_v15, %v2715_v41  ;;  %v1855_v22 = vpop.eup %1854 }
 0x27f   :  { %1462 = vst.msk [vmem:[%s3140_s4 + $0x20] sm:$0xff] %vm1457_vm9, %v1445_v31  ;;  %v1366_v11 = vsub.f32 %v3044_v7, %v1350_v51  ;;  %v1421_v21 = vmul.f32 -1.0, %v1373_v29  ;;  %v1228_v23 = vpop.xlane.xlu0 %1227  ;;  %v1857_v41 = vpop.eup %1856 }
 0x280   :  { %v1452_v62 = vmul.f32 %v1851_v35, %v1420_v2  ;;  %v1423_v45 = vmul.f32 -1.0, %v1375_v61  ;;  %v1358_v50 = vmul.f32 %v1342_v28, %v2952_v49  ;;  %v1859_v1 = vpop.eup %1858 }
 0x281   :  { %v1414_v24 = vmul.f32 -1.0, %v1366_v11  ;;  %v1453_v40 = vmul.f32 %v1853_v32, %v1421_v21 }
 0x282   :  { %1469 = vst.msk [vmem:[%s3140_s4 + $0x58] sm:$0xff] %vm1457_vm9, %v1452_v62  ;;  %v1455_v17 = vmul.f32 %v1855_v22, %v1423_v45  ;;  %v1374_v52 = vsub.f32 %v1228_v23, %v1358_v50 }
 0x283   :  { %v1446_v7 = vmul.f32 %v2993_v4, %v1414_v24  ;;  %1470 = vst.msk [vmem:[%s3140_s4 + $0x60] sm:$0xff] %vm1457_vm9, %v1453_v40  ;;  %v1232_v49 = vpop.xlane.xlu0 %1231 }
 0x284   :  { %1472 = vst.msk [vmem:[%s3140_s4 + $0x70] sm:$0xff] %vm1457_vm9, %v1455_v17  ;;  %v1422_v16 = vmul.f32 -1.0, %v1374_v52  ;;  %v1376_v44 = vsub.f32 %v1232_v49, %v1360_v59 }
 0x285   :  { %1463 = vst.msk [vmem:[%s3140_s4 + $0x28] sm:$0xff] %vm1457_vm9, %v1446_v7 }
 0x286   :  { %v1454_v63 = vmul.f32 %v1857_v41, %v1422_v16  ;;  %v1424_v4 = vmul.f32 -1.0, %v1376_v44 }
 0x288   :  { %1471 = vst.msk [vmem:[%s3140_s4 + $0x68] sm:$0xff] %vm1457_vm9, %v1454_v63  ;;  %v1456_v6 = vmul.f32 %v1859_v1, %v1424_v4 }
 0x28a   :  { %1473 = vst.msk [vmem:[%s3140_s4 + $0x78] sm:$0xff] %vm1457_vm9, %v1456_v6 }

</bundles_post_ra>
